<compile_context>
chip_gen: v7x
topology: tpu7x:2x2x1
jax: 0.10.0
libtpu: 0.0.40
codegen_flags: <defaults>
</compile_context>

<pallas_src>
import jax
import jax.numpy as jnp
from jax.experimental import pallas as pl
from jax.experimental.pallas import tpu as pltpu

# ---------------- synthetic BERT config (small) ----------------
# TODO(synk): real ProtBert ('Rostlab/prot_bert_bfd') is hidden=1024, 30 layers,
# 16 heads; a small synthetic config with random weights is used because the
# pretrained checkpoint cannot be loaded here.  Forward structure is identical.
HIDDEN = 32
HEADS = 4
HEAD_DIM = HIDDEN // HEADS
LAYERS = 2
INTERMEDIATE = 64
VOCAB = 30          # ProtBert vocab size is 30
MAX_POS = 16
TYPE_VOCAB = 2
LN_EPS = 1e-12
BATCH = 2
SEQ = 8


# ---------------- in-kernel helpers (f32 elementwise math) ----------------
def _layernorm(h, gamma, beta):
    mu = jnp.mean(h, axis=-1, keepdims=True)
    c = h - mu
    var = jnp.mean(c * c, axis=-1, keepdims=True)
    return c * jax.lax.rsqrt(var + LN_EPS) * gamma + beta


def _erf(z):
    # Abramowitz & Stegun 7.1.26 (|abs err| < 1.5e-7); only exp/abs/select ops.
    a = jnp.abs(z)
    t = 1.0 / (1.0 + 0.3275911 * a)
    poly = ((((1.061405429 * t - 1.453152027) * t + 1.421413741) * t
             - 0.284496736) * t + 0.254829592) * t
    r = 1.0 - poly * jnp.exp(-a * a)
    return jnp.where(z >= 0.0, r, -r)


def _gelu(x):
    # exact erf-GELU as in HF BERT ("gelu"), not the tanh approximation.
    return 0.5 * x * (1.0 + _erf(x * 0.7071067811865476))


# ---------------- fused encoder kernel (grid over layers) ----------------
def _fused_encoder_kernel(
    mask_ref, emb_ref, eg_ref, eb_ref,
    qw_ref, qb_ref, kw_ref, kb_ref, vw_ref, vb_ref,
    aow_ref, aob_ref, ln1g_ref, ln1b_ref,
    iw_ref, ib_ref, ow_ref, ob_ref, ln2g_ref, ln2b_ref,
    h_ref):
    layer = pl.program_id(0)

    # iteration 0: fused embedding LayerNorm seeds the VMEM-resident carry
    # (the output block, revisited every layer, doubles as the carry buffer).
    @pl.when(layer == 0)
    def _():
        h_ref[...] = _layernorm(emb_ref[...], eg_ref[...], eb_ref[...])

    x = h_ref[...]                                   # [BS, H] f32, VMEM-resident
    x_bf = x.astype(jnp.bfloat16)                    # cast only at MXU inputs

    # Q/K/V projections (bf16 in, f32 accumulate).  1/sqrt(head_dim) is already
    # folded into q_w/q_b at init.
    q = jnp.dot(x_bf, qw_ref[...], preferred_element_type=jnp.float32) + qb_ref[...]
    k = jnp.dot(x_bf, kw_ref[...], preferred_element_type=jnp.float32) + kb_ref[...]
    v = jnp.dot(x_bf, vw_ref[...], preferred_element_type=jnp.float32) + vb_ref[...]

    # Precomputed [BS, BS] additive bias: HF -10000 key-padding term plus a
    # block-diagonal batch term, so one score matmul per head covers all batches.
    add_bias = mask_ref[...]

    # Per-head true [BS, head_dim] contractions (no redundant HIDDEN-wide work).
    # 4-way static unroll is fine at this size; use a batched contraction or
    # fori_loop(unroll=True) at 16 heads / real head_dim.
    attn = None
    for h in range(HEADS):
        lo = h * HEAD_DIM
        hi = lo + HEAD_DIM
        qh = q[:, lo:hi].astype(jnp.bfloat16)        # [BS, d]
        kh = k[:, lo:hi].astype(jnp.bfloat16)
        vh = v[:, lo:hi].astype(jnp.bfloat16)

        s = jnp.einsum("qd,kd->qk", qh, kh,
                       preferred_element_type=jnp.float32)        # [BS, BS]
        s = s + add_bias
        s = s - jnp.max(s, axis=-1, keepdims=True)
        p = jnp.exp(s)
        # EUP approx reciprocal (documented softmax pattern); switch to exact
        # division for a bitwise-faithful correctness mode.
        p = p * pl.reciprocal(jnp.sum(p, axis=-1, keepdims=True), approx=True)

        ch = jnp.dot(p.astype(jnp.bfloat16), vh,
                     preferred_element_type=jnp.float32)           # [BS, d]
        # Fold this head's context straight through its slab of the attention
        # output projection -> no concatenate / no materialized ctx tensor.
        contrib = jnp.dot(ch.astype(jnp.bfloat16), aow_ref[lo:hi, :],
                          preferred_element_type=jnp.float32)      # [BS, H]
        attn = contrib if attn is None else attn + contrib
    attn = attn + aob_ref[...]

    # attention residual + LayerNorm (fused)
    x = _layernorm(attn + x, ln1g_ref[...], ln1b_ref[...])

    # feed-forward + residual + LayerNorm (fused)
    x_bf = x.astype(jnp.bfloat16)
    inter = _gelu(jnp.dot(x_bf, iw_ref[...],
                          preferred_element_type=jnp.float32) + ib_ref[...])
    ffn = jnp.dot(inter.astype(jnp.bfloat16), ow_ref[...],
                  preferred_element_type=jnp.float32) + ob_ref[...]
    x = _layernorm(ffn + x, ln2g_ref[...], ln2b_ref[...])

    h_ref[...] = x                                   # carry to next layer


# ---------------- parameter init (deterministic, synthetic) ----------------
def init_params(key):
    keys = iter(jax.random.split(key, 64))

    def w(shape, dtype=jnp.float32, scale=0.02):
        return (jax.random.normal(next(keys), shape, jnp.float32) * scale).astype(dtype)

    def stack(shape, scale=0.02):
        # per-layer stacked MXU weights, stored bf16 (halves DMA + VMEM residency)
        return jnp.stack([w(shape, jnp.bfloat16, scale) for _ in range(LAYERS)], axis=0)

    zeros = lambda *s: jnp.zeros(s, jnp.float32)
    ones = lambda *s: jnp.ones(s, jnp.float32)

    inv_sqrt_d = 1.0 / float(HEAD_DIM) ** 0.5

    # NOTE: all Linear weights are stored pre-transposed in the MXU-friendly
    # [in_features, out_features] layout; a real PyTorch checkpoint's [N, K]
    # f32 weights would be transposed, scaled (Q only) and cast to bf16 exactly
    # once at load time.
    return {
        "word_emb": w((VOCAB, HIDDEN)),
        "pos_emb": w((MAX_POS, HIDDEN)),
        "type_emb": w((TYPE_VOCAB, HIDDEN)),
        "emb_ln_g": ones(1, HIDDEN), "emb_ln_b": zeros(1, HIDDEN),
        "pool_w": w((HIDDEN, HIDDEN)), "pool_b": zeros(1, HIDDEN),
        # 1/sqrt(head_dim) folded into the Q projection (weight; bias is zero
        # here, a real bias would be scaled identically).
        "q_w": stack((HIDDEN, HIDDEN), scale=0.02 * inv_sqrt_d),
        "q_b": zeros(LAYERS, 1, HIDDEN),
        "k_w": stack((HIDDEN, HIDDEN)), "k_b": zeros(LAYERS, 1, HIDDEN),
        "v_w": stack((HIDDEN, HIDDEN)), "v_b": zeros(LAYERS, 1, HIDDEN),
        "ao_w": stack((HIDDEN, HIDDEN)), "ao_b": zeros(LAYERS, 1, HIDDEN),
        "ln1_g": ones(LAYERS, 1, HIDDEN), "ln1_b": zeros(LAYERS, 1, HIDDEN),
        "i_w": stack((HIDDEN, INTERMEDIATE)), "i_b": zeros(LAYERS, 1, INTERMEDIATE),
        "o_w": stack((INTERMEDIATE, HIDDEN)), "o_b": zeros(LAYERS, 1, HIDDEN),
        "ln2_g": ones(LAYERS, 1, HIDDEN), "ln2_b": zeros(LAYERS, 1, HIDDEN),
    }


# ---------------- forward pass (mirrors BertModel -> pooler_output) ----------------
@jax.jit
def bert_transformer_forward(params, input_ids, attention_mask):
    B, S = input_ids.shape
    BS = B * S

    # embeddings: table gathers stay in plain JAX glue (no clean in-kernel
    # equivalent at this granularity); embedding LayerNorm is fused in-kernel.
    we = params["word_emb"][input_ids]               # [B, S, H]
    pe = params["pos_emb"][jnp.arange(S)]            # [S, H]
    te = params["type_emb"][0]                       # [H]  (token_type_ids == 0)
    emb = (we + pe[None, :, :] + te[None, None, :]).reshape(BS, HIDDEN)

    # additive attention bias, built ONCE outside the layer loop (hoisted):
    # HF-style (1-mask)*-10000 key-padding bias plus a block-diagonal batch term.
    mask_f = attention_mask.astype(jnp.float32)
    key_bias = ((1.0 - mask_f) * -10000.0).reshape(1, BS)
    bid = jnp.arange(BS, dtype=jnp.int32) // S
    same_batch = bid[:, None] == bid[None, :]
    add_bias = key_bias + jnp.where(same_batch, 0.0, -1e9)   # [BS, BS]

    def full2(shape):                                # same block every layer step
        return pl.BlockSpec(shape, lambda l: (0, 0))

    def per_layer(shape):                            # slice layer l of a stacked array
        return pl.BlockSpec((None,) + shape, lambda l: (l, 0, 0))

    in_specs = [
        full2((BS, BS)),                             # additive attention bias
        full2((BS, HIDDEN)),                         # summed embeddings (pre-LN)
        full2((1, HIDDEN)), full2((1, HIDDEN)),      # embedding LN gamma/beta
        per_layer((HIDDEN, HIDDEN)), per_layer((1, HIDDEN)),             # q
        per_layer((HIDDEN, HIDDEN)), per_layer((1, HIDDEN)),             # k
        per_layer((HIDDEN, HIDDEN)), per_layer((1, HIDDEN)),             # v
        per_layer((HIDDEN, HIDDEN)), per_layer((1, HIDDEN)),             # attn out proj
        per_layer((1, HIDDEN)), per_layer((1, HIDDEN)),                  # LN1
        per_layer((HIDDEN, INTERMEDIATE)), per_layer((1, INTERMEDIATE)), # FFN in
        per_layer((INTERMEDIATE, HIDDEN)), per_layer((1, HIDDEN)),       # FFN out
        per_layer((1, HIDDEN)), per_layer((1, HIDDEN)),                  # LN2
    ]

    hidden = pl.pallas_call(
        _fused_encoder_kernel,
        out_shape=jax.ShapeDtypeStruct((BS, HIDDEN), jnp.float32),
        grid_spec=pltpu.PrefetchScalarGridSpec(
            num_scalar_prefetch=0,
            grid=(LAYERS,),
            in_specs=in_specs,
            # constant index map => output block stays VMEM-resident across the
            # layer axis and doubles as the hidden-state carry (no scratch).
            out_specs=pl.BlockSpec((BS, HIDDEN), lambda l: (0, 0)),
        ),
        compiler_params=pltpu.CompilerParams(
            dimension_semantics=("arbitrary",),      # layer loop is sequential
            # explicit scoped-VMEM budget (v5e default is only 16 MiB); re-derive
            # with FFN tiling when scaling to real ProtBert layer sizes.
            vmem_limit_bytes=32 * 1024 * 1024,
        ),
    )(
        add_bias, emb, params["emb_ln_g"], params["emb_ln_b"],
        params["q_w"], params["q_b"], params["k_w"], params["k_b"],
        params["v_w"], params["v_b"], params["ao_w"], params["ao_b"],
        params["ln1_g"], params["ln1_b"], params["i_w"], params["i_b"],
        params["o_w"], params["o_b"], params["ln2_g"], params["ln2_b"],
    )

    # pooler = tanh(Linear(hidden[:, 0])) == BertModel outputs[1]; kept outside
    # the fused kernel so pool_w/pool_b are never held in VMEM across every
    # layer iteration and the CLS gather is not a sublane-sparse in-kernel copy.
    cls = hidden.reshape(B, S, HIDDEN)[:, 0, :]
    pooled = jnp.tanh(jnp.dot(cls, params["pool_w"]) + params["pool_b"])
    return pooled                                    # [B, H]


if __name__ == "__main__":
    key = jax.random.PRNGKey(0)
    pkey, ikey = jax.random.split(key)

    params = init_params(pkey)

    # deterministic example inputs
    input_ids = jax.random.randint(ikey, (BATCH, SEQ), 0, VOCAB, dtype=jnp.int32)
    attention_mask = jnp.ones((BATCH, SEQ), jnp.int32)
    attention_mask = attention_mask.at[1, -2:].set(0)   # pad the tail of batch 1

    pooled = bert_transformer_forward(params, input_ids, attention_mask)
    pooled = jax.block_until_ready(pooled)
    assert pooled.shape == (BATCH, HIDDEN)
    assert bool(jnp.all(jnp.isfinite(pooled)))
    print("KERNEL_OK")
</pallas_src>

<mosaic_0001>
module attributes {stable_mosaic.version = 11 : i64} {
  func.func @_fused_encoder_kernel(%arg0: i32, %arg1: memref<16x16xf32, #tpu.memory_space<vmem>>, %arg2: memref<16x32xf32, #tpu.memory_space<vmem>>, %arg3: memref<1x32xf32, #tpu.memory_space<vmem>>, %arg4: memref<1x32xf32, #tpu.memory_space<vmem>>, %arg5: memref<1x32x32xbf16, #tpu.memory_space<vmem>>, %arg6: memref<1x1x32xf32, #tpu.memory_space<vmem>>, %arg7: memref<1x32x32xbf16, #tpu.memory_space<vmem>>, %arg8: memref<1x1x32xf32, #tpu.memory_space<vmem>>, %arg9: memref<1x32x32xbf16, #tpu.memory_space<vmem>>, %arg10: memref<1x1x32xf32, #tpu.memory_space<vmem>>, %arg11: memref<1x32x32xbf16, #tpu.memory_space<vmem>>, %arg12: memref<1x1x32xf32, #tpu.memory_space<vmem>>, %arg13: memref<1x1x32xf32, #tpu.memory_space<vmem>>, %arg14: memref<1x1x32xf32, #tpu.memory_space<vmem>>, %arg15: memref<1x32x64xbf16, #tpu.memory_space<vmem>>, %arg16: memref<1x1x64xf32, #tpu.memory_space<vmem>>, %arg17: memref<1x64x32xbf16, #tpu.memory_space<vmem>>, %arg18: memref<1x1x32xf32, #tpu.memory_space<vmem>>, %arg19: memref<1x1x32xf32, #tpu.memory_space<vmem>>, %arg20: memref<1x1x32xf32, #tpu.memory_space<vmem>>, %arg21: memref<16x32xf32, #tpu.memory_space<vmem>>) attributes {dimension_semantics = [#tpu.dimension_semantics<arbitrary>], iteration_bounds = array<i64: 2>, scalar_prefetch = 0 : i64, scratch_operands = 0 : i64, tpu.core_type = #tpu.core_type<tc>, window_params = [{pipeline_mode = #tpu.pipeline_mode<synchronous>, transform_indices = @transform_0, window_bounds = array<i64: 16, 16>}, {pipeline_mode = #tpu.pipeline_mode<synchronous>, transform_indices = @transform_1, window_bounds = array<i64: 16, 32>}, {pipeline_mode = #tpu.pipeline_mode<synchronous>, transform_indices = @transform_2, window_bounds = array<i64: 1, 32>}, {pipeline_mode = #tpu.pipeline_mode<synchronous>, transform_indices = @transform_3, window_bounds = array<i64: 1, 32>}, {transform_indices = @transform_4, window_bounds = array<i64: 1, 32, 32>}, {transform_indices = @transform_5, window_bounds = array<i64: 1, 1, 32>}, {transform_indices = @transform_6, window_bounds = array<i64: 1, 32, 32>}, {transform_indices = @transform_7, window_bounds = array<i64: 1, 1, 32>}, {transform_indices = @transform_8, window_bounds = array<i64: 1, 32, 32>}, {transform_indices = @transform_9, window_bounds = array<i64: 1, 1, 32>}, {transform_indices = @transform_10, window_bounds = array<i64: 1, 32, 32>}, {transform_indices = @transform_11, window_bounds = array<i64: 1, 1, 32>}, {transform_indices = @transform_12, window_bounds = array<i64: 1, 1, 32>}, {transform_indices = @transform_13, window_bounds = array<i64: 1, 1, 32>}, {transform_indices = @transform_14, window_bounds = array<i64: 1, 32, 64>}, {transform_indices = @transform_15, window_bounds = array<i64: 1, 1, 64>}, {transform_indices = @transform_16, window_bounds = array<i64: 1, 64, 32>}, {transform_indices = @transform_17, window_bounds = array<i64: 1, 1, 32>}, {transform_indices = @transform_18, window_bounds = array<i64: 1, 1, 32>}, {transform_indices = @transform_19, window_bounds = array<i64: 1, 1, 32>}, {pipeline_mode = #tpu.pipeline_mode<synchronous>, transform_indices = @transform_20, window_bounds = array<i64: 16, 32>}]} {
    %c0_i32 = arith.constant 0 : i32
    %0 = arith.cmpi eq, %arg0, %c0_i32 : i32
    %1 = arith.extui %0 : i1 to i32
    %c0_i32_0 = arith.constant 0 : i32
    %2 = arith.cmpi ne, %1, %c0_i32_0 : i32
    scf.if %2 {
      %c0_109 = arith.constant 0 : index
      %c0_110 = arith.constant 0 : index
      %237 = vector.load %arg2[%c0_109, %c0_110] : memref<16x32xf32, #tpu.memory_space<vmem>>, vector<16x32xf32>
      %c0_111 = arith.constant 0 : index
      %c0_112 = arith.constant 0 : index
      %238 = vector.load %arg3[%c0_111, %c0_112] : memref<1x32xf32, #tpu.memory_space<vmem>>, vector<1x32xf32>
      %c0_113 = arith.constant 0 : index
      %c0_114 = arith.constant 0 : index
      %239 = vector.load %arg4[%c0_113, %c0_114] : memref<1x32xf32, #tpu.memory_space<vmem>>, vector<1x32xf32>
      %cst_115 = arith.constant dense<0.000000e+00> : vector<16xf32>
      %240 = vector.multi_reduction <add>, %237, %cst_115 [1] : vector<16x32xf32> to vector<16xf32>
      %241 = vector.shape_cast %240 : vector<16xf32> to vector<16x1xf32>
      %cst_116 = arith.constant 3.200000e+01 : f32
      %242 = vector.broadcast %cst_116 : f32 to vector<16x1xf32>
      %243 = arith.divf %241, %242 : vector<16x1xf32>
      %244 = vector.broadcast %243 : vector<16x1xf32> to vector<16x32xf32>
      %245 = arith.subf %237, %244 : vector<16x32xf32>
      %246 = arith.mulf %245, %245 : vector<16x32xf32>
      %cst_117 = arith.constant dense<0.000000e+00> : vector<16xf32>
      %247 = vector.multi_reduction <add>, %246, %cst_117 [1] : vector<16x32xf32> to vector<16xf32>
      %248 = vector.shape_cast %247 : vector<16xf32> to vector<16x1xf32>
      %cst_118 = arith.constant 3.200000e+01 : f32
      %249 = vector.broadcast %cst_118 : f32 to vector<16x1xf32>
      %250 = arith.divf %248, %249 : vector<16x1xf32>
      %cst_119 = arith.constant 9.99999996E-13 : f32
      %251 = vector.broadcast %cst_119 : f32 to vector<16x1xf32>
      %252 = arith.addf %250, %251 : vector<16x1xf32>
      %253 = math.rsqrt %252 : vector<16x1xf32>
      %254 = vector.broadcast %253 : vector<16x1xf32> to vector<16x32xf32>
      %255 = arith.mulf %245, %254 : vector<16x32xf32>
      %256 = vector.broadcast %238 : vector<1x32xf32> to vector<16x32xf32>
      %257 = arith.mulf %255, %256 : vector<16x32xf32>
      %258 = vector.broadcast %239 : vector<1x32xf32> to vector<16x32xf32>
      %259 = arith.addf %257, %258 : vector<16x32xf32>
      %c0_120 = arith.constant 0 : index
      %c0_121 = arith.constant 0 : index
      %260 = vector.load %arg21[%c0_120, %c0_121] : memref<16x32xf32, #tpu.memory_space<vmem>>, vector<16x32xf32>
      tpu.vector_store %arg21[%c0_120, %c0_121], %259 {strides = array<i32>} : memref<16x32xf32, #tpu.memory_space<vmem>>, vector<16x32xf32>,
    } else {
    }
    %c0 = arith.constant 0 : index
    %c0_1 = arith.constant 0 : index
    %3 = vector.load %arg21[%c0, %c0_1] : memref<16x32xf32, #tpu.memory_space<vmem>>, vector<16x32xf32>
    %4 = arith.truncf %3 : vector<16x32xf32> to vector<16x32xbf16>
    %c0_2 = arith.constant 0 : index
    %c0_3 = arith.constant 0 : index
    %c0_4 = arith.constant 0 : index
    %5 = vector.load %arg5[%c0_2, %c0_3, %c0_4] : memref<1x32x32xbf16, #tpu.memory_space<vmem>>, vector<1x32x32xbf16>
    %6 = vector.shape_cast %5 : vector<1x32x32xbf16> to vector<32x32xbf16>
    %cst = arith.constant dense<0.000000e+00> : vector<16x32xf32>
    %7 = tpu.matmul %4, %6, %cst {dimension_numbers = #tpu.dot_dimension_numbers<[1], [0], [0], [1], [0, 0, 1, 1], [], []>} : vector<16x32xbf16>, vector<32x32xbf16>, vector<16x32xf32> -> vector<16x32xf32>
    %c0_5 = arith.constant 0 : index
    %c0_6 = arith.constant 0 : index
    %c0_7 = arith.constant 0 : index
    %8 = vector.load %arg6[%c0_5, %c0_6, %c0_7] : memref<1x1x32xf32, #tpu.memory_space<vmem>>, vector<1x1x32xf32>
    %9 = vector.shape_cast %8 : vector<1x1x32xf32> to vector<1x32xf32>
    %10 = vector.broadcast %9 : vector<1x32xf32> to vector<16x32xf32>
    %11 = arith.addf %7, %10 : vector<16x32xf32>
    %c0_8 = arith.constant 0 : index
    %c0_9 = arith.constant 0 : index
    %c0_10 = arith.constant 0 : index
    %12 = vector.load %arg7[%c0_8, %c0_9, %c0_10] : memref<1x32x32xbf16, #tpu.memory_space<vmem>>, vector<1x32x32xbf16>
    %13 = vector.shape_cast %12 : vector<1x32x32xbf16> to vector<32x32xbf16>
    %cst_11 = arith.constant dense<0.000000e+00> : vector<16x32xf32>
    %14 = tpu.matmul %4, %13, %cst_11 {dimension_numbers = #tpu.dot_dimension_numbers<[1], [0], [0], [1], [0, 0, 1, 1], [], []>} : vector<16x32xbf16>, vector<32x32xbf16>, vector<16x32xf32> -> vector<16x32xf32>
    %c0_12 = arith.constant 0 : index
    %c0_13 = arith.constant 0 : index
    %c0_14 = arith.constant 0 : index
    %15 = vector.load %arg8[%c0_12, %c0_13, %c0_14] : memref<1x1x32xf32, #tpu.memory_space<vmem>>, vector<1x1x32xf32>
    %16 = vector.shape_cast %15 : vector<1x1x32xf32> to vector<1x32xf32>
    %17 = vector.broadcast %16 : vector<1x32xf32> to vector<16x32xf32>
    %18 = arith.addf %14, %17 : vector<16x32xf32>
    %c0_15 = arith.constant 0 : index
    %c0_16 = arith.constant 0 : index
    %c0_17 = arith.constant 0 : index
    %19 = vector.load %arg9[%c0_15, %c0_16, %c0_17] : memref<1x32x32xbf16, #tpu.memory_space<vmem>>, vector<1x32x32xbf16>
    %20 = vector.shape_cast %19 : vector<1x32x32xbf16> to vector<32x32xbf16>
    %cst_18 = arith.constant dense<0.000000e+00> : vector<16x32xf32>
    %21 = tpu.matmul %4, %20, %cst_18 {dimension_numbers = #tpu.dot_dimension_numbers<[1], [0], [0], [1], [0, 0, 1, 1], [], []>} : vector<16x32xbf16>, vector<32x32xbf16>, vector<16x32xf32> -> vector<16x32xf32>
    %c0_19 = arith.constant 0 : index
    %c0_20 = arith.constant 0 : index
    %c0_21 = arith.constant 0 : index
    %22 = vector.load %arg10[%c0_19, %c0_20, %c0_21] : memref<1x1x32xf32, #tpu.memory_space<vmem>>, vector<1x1x32xf32>
    %23 = vector.shape_cast %22 : vector<1x1x32xf32> to vector<1x32xf32>
    %24 = vector.broadcast %23 : vector<1x32xf32> to vector<16x32xf32>
    %25 = arith.addf %21, %24 : vector<16x32xf32>
    %c0_22 = arith.constant 0 : index
    %c0_23 = arith.constant 0 : index
    %26 = vector.load %arg1[%c0_22, %c0_23] : memref<16x16xf32, #tpu.memory_space<vmem>>, vector<16x16xf32>
    %27 = vector.extract_strided_slice %11 {offsets = [0, 0], sizes = [16, 8], strides = [1, 1]} : vector<16x32xf32> to vector<16x8xf32>
    %28 = arith.truncf %27 : vector<16x8xf32> to vector<16x8xbf16>
    %29 = vector.extract_strided_slice %18 {offsets = [0, 0], sizes = [16, 8], strides = [1, 1]} : vector<16x32xf32> to vector<16x8xf32>
    %30 = arith.truncf %29 : vector<16x8xf32> to vector<16x8xbf16>
    %31 = vector.extract_strided_slice %25 {offsets = [0, 0], sizes = [16, 8], strides = [1, 1]} : vector<16x32xf32> to vector<16x8xf32>
    %32 = arith.truncf %31 : vector<16x8xf32> to vector<16x8xbf16>
    "tpu.trace_start"() <{level = 10 : i32, message = "qd,kd->qk"}> : () -> ()
    %cst_24 = arith.constant dense<0.000000e+00> : vector<16x16xf32>
    %33 = tpu.matmul %28, %30, %cst_24 {dimension_numbers = #tpu.dot_dimension_numbers<[1], [1], [0], [0], [0, 0, 1, 0], [], []>} : vector<16x8xbf16>, vector<16x8xbf16>, vector<16x16xf32> -> vector<16x16xf32>
    "tpu.trace_stop"() : () -> ()
    %34 = arith.addf %33, %26 : vector<16x16xf32>
    %cst_25 = arith.constant dense<0xFF800000> : vector<16xf32>
    %35 = vector.multi_reduction <maximumf>, %34, %cst_25 [1] : vector<16x16xf32> to vector<16xf32>
    %36 = vector.shape_cast %35 : vector<16xf32> to vector<16x1xf32>
    %37 = vector.broadcast %36 : vector<16x1xf32> to vector<16x16xf32>
    %38 = arith.subf %34, %37 : vector<16x16xf32>
    %39 = math.exp %38 : vector<16x16xf32>
    %cst_26 = arith.constant dense<0.000000e+00> : vector<16xf32>
    %40 = vector.multi_reduction <add>, %39, %cst_26 [1] : vector<16x16xf32> to vector<16xf32>
    %41 = vector.shape_cast %40 : vector<16xf32> to vector<16x1xf32>
    %42 = tpu.reciprocal %41 {approx = true} : vector<16x1xf32> -> vector<16x1xf32>
    %43 = vector.broadcast %42 : vector<16x1xf32> to vector<16x16xf32>
    %44 = arith.mulf %39, %43 : vector<16x16xf32>
    %45 = arith.truncf %44 : vector<16x16xf32> to vector<16x16xbf16>
    %cst_27 = arith.constant dense<0.000000e+00> : vector<16x8xf32>
    %46 = tpu.matmul %45, %32, %cst_27 {dimension_numbers = #tpu.dot_dimension_numbers<[1], [0], [0], [1], [0, 0, 1, 1], [], []>} : vector<16x16xbf16>, vector<16x8xbf16>, vector<16x8xf32> -> vector<16x8xf32>
    %47 = arith.truncf %46 : vector<16x8xf32> to vector<16x8xbf16>
    %c0_28 = arith.constant 0 : index
    %c0_29 = arith.constant 0 : index
    %c0_30 = arith.constant 0 : index
    %48 = vector.load %arg11[%c0_28, %c0_29, %c0_30] : memref<1x32x32xbf16, #tpu.memory_space<vmem>>, vector<1x8x32xbf16>
    %49 = vector.shape_cast %48 : vector<1x8x32xbf16> to vector<8x32xbf16>
    %cst_31 = arith.constant dense<0.000000e+00> : vector<16x32xf32>
    %50 = tpu.matmul %47, %49, %cst_31 {dimension_numbers = #tpu.dot_dimension_numbers<[1], [0], [0], [1], [0, 0, 1, 1], [], []>} : vector<16x8xbf16>, vector<8x32xbf16>, vector<16x32xf32> -> vector<16x32xf32>
    %51 = vector.extract_strided_slice %11 {offsets = [0, 8], sizes = [16, 8], strides = [1, 1]} : vector<16x32xf32> to vector<16x8xf32>
    %52 = arith.truncf %51 : vector<16x8xf32> to vector<16x8xbf16>
    %53 = vector.extract_strided_slice %18 {offsets = [0, 8], sizes = [16, 8], strides = [1, 1]} : vector<16x32xf32> to vector<16x8xf32>
    %54 = arith.truncf %53 : vector<16x8xf32> to vector<16x8xbf16>
    %55 = vector.extract_strided_slice %25 {offsets = [0, 8], sizes = [16, 8], strides = [1, 1]} : vector<16x32xf32> to vector<16x8xf32>
    %56 = arith.truncf %55 : vector<16x8xf32> to vector<16x8xbf16>
    "tpu.trace_start"() <{level = 10 : i32, message = "qd,kd->qk"}> : () -> ()
    %cst_32 = arith.constant dense<0.000000e+00> : vector<16x16xf32>
    %57 = tpu.matmul %52, %54, %cst_32 {dimension_numbers = #tpu.dot_dimension_numbers<[1], [1], [0], [0], [0, 0, 1, 0], [], []>} : vector<16x8xbf16>, vector<16x8xbf16>, vector<16x16xf32> -> vector<16x16xf32>
    "tpu.trace_stop"() : () -> ()
    %58 = arith.addf %57, %26 : vector<16x16xf32>
    %cst_33 = arith.constant dense<0xFF800000> : vector<16xf32>
    %59 = vector.multi_reduction <maximumf>, %58, %cst_33 [1] : vector<16x16xf32> to vector<16xf32>
    %60 = vector.shape_cast %59 : vector<16xf32> to vector<16x1xf32>
    %61 = vector.broadcast %60 : vector<16x1xf32> to vector<16x16xf32>
    %62 = arith.subf %58, %61 : vector<16x16xf32>
    %63 = math.exp %62 : vector<16x16xf32>
    %cst_34 = arith.constant dense<0.000000e+00> : vector<16xf32>
    %64 = vector.multi_reduction <add>, %63, %cst_34 [1] : vector<16x16xf32> to vector<16xf32>
    %65 = vector.shape_cast %64 : vector<16xf32> to vector<16x1xf32>
    %66 = tpu.reciprocal %65 {approx = true} : vector<16x1xf32> -> vector<16x1xf32>
    %67 = vector.broadcast %66 : vector<16x1xf32> to vector<16x16xf32>
    %68 = arith.mulf %63, %67 : vector<16x16xf32>
    %69 = arith.truncf %68 : vector<16x16xf32> to vector<16x16xbf16>
    %cst_35 = arith.constant dense<0.000000e+00> : vector<16x8xf32>
    %70 = tpu.matmul %69, %56, %cst_35 {dimension_numbers = #tpu.dot_dimension_numbers<[1], [0], [0], [1], [0, 0, 1, 1], [], []>} : vector<16x16xbf16>, vector<16x8xbf16>, vector<16x8xf32> -> vector<16x8xf32>
    %71 = arith.truncf %70 : vector<16x8xf32> to vector<16x8xbf16>
    %c0_36 = arith.constant 0 : index
    %c8 = arith.constant 8 : index
    %c0_37 = arith.constant 0 : index
    %72 = vector.load %arg11[%c0_36, %c8, %c0_37] : memref<1x32x32xbf16, #tpu.memory_space<vmem>>, vector<1x8x32xbf16>
    %73 = vector.shape_cast %72 : vector<1x8x32xbf16> to vector<8x32xbf16>
    %cst_38 = arith.constant dense<0.000000e+00> : vector<16x32xf32>
    %74 = tpu.matmul %71, %73, %cst_38 {dimension_numbers = #tpu.dot_dimension_numbers<[1], [0], [0], [1], [0, 0, 1, 1], [], []>} : vector<16x8xbf16>, vector<8x32xbf16>, vector<16x32xf32> -> vector<16x32xf32>
    %75 = arith.addf %50, %74 : vector<16x32xf32>
    %76 = vector.extract_strided_slice %11 {offsets = [0, 16], sizes = [16, 8], strides = [1, 1]} : vector<16x32xf32> to vector<16x8xf32>
    %77 = arith.truncf %76 : vector<16x8xf32> to vector<16x8xbf16>
    %78 = vector.extract_strided_slice %18 {offsets = [0, 16], sizes = [16, 8], strides = [1, 1]} : vector<16x32xf32> to vector<16x8xf32>
    %79 = arith.truncf %78 : vector<16x8xf32> to vector<16x8xbf16>
    %80 = vector.extract_strided_slice %25 {offsets = [0, 16], sizes = [16, 8], strides = [1, 1]} : vector<16x32xf32> to vector<16x8xf32>
    %81 = arith.truncf %80 : vector<16x8xf32> to vector<16x8xbf16>
    "tpu.trace_start"() <{level = 10 : i32, message = "qd,kd->qk"}> : () -> ()
    %cst_39 = arith.constant dense<0.000000e+00> : vector<16x16xf32>
    %82 = tpu.matmul %77, %79, %cst_39 {dimension_numbers = #tpu.dot_dimension_numbers<[1], [1], [0], [0], [0, 0, 1, 0], [], []>} : vector<16x8xbf16>, vector<16x8xbf16>, vector<16x16xf32> -> vector<16x16xf32>
    "tpu.trace_stop"() : () -> ()
    %83 = arith.addf %82, %26 : vector<16x16xf32>
    %cst_40 = arith.constant dense<0xFF800000> : vector<16xf32>
    %84 = vector.multi_reduction <maximumf>, %83, %cst_40 [1] : vector<16x16xf32> to vector<16xf32>
    %85 = vector.shape_cast %84 : vector<16xf32> to vector<16x1xf32>
    %86 = vector.broadcast %85 : vector<16x1xf32> to vector<16x16xf32>
    %87 = arith.subf %83, %86 : vector<16x16xf32>
    %88 = math.exp %87 : vector<16x16xf32>
    %cst_41 = arith.constant dense<0.000000e+00> : vector<16xf32>
    %89 = vector.multi_reduction <add>, %88, %cst_41 [1] : vector<16x16xf32> to vector<16xf32>
    %90 = vector.shape_cast %89 : vector<16xf32> to vector<16x1xf32>
    %91 = tpu.reciprocal %90 {approx = true} : vector<16x1xf32> -> vector<16x1xf32>
    %92 = vector.broadcast %91 : vector<16x1xf32> to vector<16x16xf32>
    %93 = arith.mulf %88, %92 : vector<16x16xf32>
    %94 = arith.truncf %93 : vector<16x16xf32> to vector<16x16xbf16>
    %cst_42 = arith.constant dense<0.000000e+00> : vector<16x8xf32>
    %95 = tpu.matmul %94, %81, %cst_42 {dimension_numbers = #tpu.dot_dimension_numbers<[1], [0], [0], [1], [0, 0, 1, 1], [], []>} : vector<16x16xbf16>, vector<16x8xbf16>, vector<16x8xf32> -> vector<16x8xf32>
    %96 = arith.truncf %95 : vector<16x8xf32> to vector<16x8xbf16>
    %c0_43 = arith.constant 0 : index
    %c16 = arith.constant 16 : index
    %c0_44 = arith.constant 0 : index
    %97 = vector.load %arg11[%c0_43, %c16, %c0_44] : memref<1x32x32xbf16, #tpu.memory_space<vmem>>, vector<1x8x32xbf16>
    %98 = vector.shape_cast %97 : vector<1x8x32xbf16> to vector<8x32xbf16>
    %cst_45 = arith.constant dense<0.000000e+00> : vector<16x32xf32>
    %99 = tpu.matmul %96, %98, %cst_45 {dimension_numbers = #tpu.dot_dimension_numbers<[1], [0], [0], [1], [0, 0, 1, 1], [], []>} : vector<16x8xbf16>, vector<8x32xbf16>, vector<16x32xf32> -> vector<16x32xf32>
    %100 = arith.addf %75, %99 : vector<16x32xf32>
    %101 = vector.extract_strided_slice %11 {offsets = [0, 24], sizes = [16, 8], strides = [1, 1]} : vector<16x32xf32> to vector<16x8xf32>
    %102 = arith.truncf %101 : vector<16x8xf32> to vector<16x8xbf16>
    %103 = vector.extract_strided_slice %18 {offsets = [0, 24], sizes = [16, 8], strides = [1, 1]} : vector<16x32xf32> to vector<16x8xf32>
    %104 = arith.truncf %103 : vector<16x8xf32> to vector<16x8xbf16>
    %105 = vector.extract_strided_slice %25 {offsets = [0, 24], sizes = [16, 8], strides = [1, 1]} : vector<16x32xf32> to vector<16x8xf32>
    %106 = arith.truncf %105 : vector<16x8xf32> to vector<16x8xbf16>
    "tpu.trace_start"() <{level = 10 : i32, message = "qd,kd->qk"}> : () -> ()
    %cst_46 = arith.constant dense<0.000000e+00> : vector<16x16xf32>
    %107 = tpu.matmul %102, %104, %cst_46 {dimension_numbers = #tpu.dot_dimension_numbers<[1], [1], [0], [0], [0, 0, 1, 0], [], []>} : vector<16x8xbf16>, vector<16x8xbf16>, vector<16x16xf32> -> vector<16x16xf32>
    "tpu.trace_stop"() : () -> ()
    %108 = arith.addf %107, %26 : vector<16x16xf32>
    %cst_47 = arith.constant dense<0xFF800000> : vector<16xf32>
    %109 = vector.multi_reduction <maximumf>, %108, %cst_47 [1] : vector<16x16xf32> to vector<16xf32>
    %110 = vector.shape_cast %109 : vector<16xf32> to vector<16x1xf32>
    %111 = vector.broadcast %110 : vector<16x1xf32> to vector<16x16xf32>
    %112 = arith.subf %108, %111 : vector<16x16xf32>
    %113 = math.exp %112 : vector<16x16xf32>
    %cst_48 = arith.constant dense<0.000000e+00> : vector<16xf32>
    %114 = vector.multi_reduction <add>, %113, %cst_48 [1] : vector<16x16xf32> to vector<16xf32>
    %115 = vector.shape_cast %114 : vector<16xf32> to vector<16x1xf32>
    %116 = tpu.reciprocal %115 {approx = true} : vector<16x1xf32> -> vector<16x1xf32>
    %117 = vector.broadcast %116 : vector<16x1xf32> to vector<16x16xf32>
    %118 = arith.mulf %113, %117 : vector<16x16xf32>
    %119 = arith.truncf %118 : vector<16x16xf32> to vector<16x16xbf16>
    %cst_49 = arith.constant dense<0.000000e+00> : vector<16x8xf32>
    %120 = tpu.matmul %119, %106, %cst_49 {dimension_numbers = #tpu.dot_dimension_numbers<[1], [0], [0], [1], [0, 0, 1, 1], [], []>} : vector<16x16xbf16>, vector<16x8xbf16>, vector<16x8xf32> -> vector<16x8xf32>
    %121 = arith.truncf %120 : vector<16x8xf32> to vector<16x8xbf16>
    %c0_50 = arith.constant 0 : index
    %c24 = arith.constant 24 : index
    %c0_51 = arith.constant 0 : index
    %122 = vector.load %arg11[%c0_50, %c24, %c0_51] : memref<1x32x32xbf16, #tpu.memory_space<vmem>>, vector<1x8x32xbf16>
    %123 = vector.shape_cast %122 : vector<1x8x32xbf16> to vector<8x32xbf16>
    %cst_52 = arith.constant dense<0.000000e+00> : vector<16x32xf32>
    %124 = tpu.matmul %121, %123, %cst_52 {dimension_numbers = #tpu.dot_dimension_numbers<[1], [0], [0], [1], [0, 0, 1, 1], [], []>} : vector<16x8xbf16>, vector<8x32xbf16>, vector<16x32xf32> -> vector<16x32xf32>
    %125 = arith.addf %100, %124 : vector<16x32xf32>
    %c0_53 = arith.constant 0 : index
    %c0_54 = arith.constant 0 : index
    %c0_55 = arith.constant 0 : index
    %126 = vector.load %arg12[%c0_53, %c0_54, %c0_55] : memref<1x1x32xf32, #tpu.memory_space<vmem>>, vector<1x1x32xf32>
    %127 = vector.shape_cast %126 : vector<1x1x32xf32> to vector<1x32xf32>
    %128 = vector.broadcast %127 : vector<1x32xf32> to vector<16x32xf32>
    %129 = arith.addf %125, %128 : vector<16x32xf32>
    %130 = arith.addf %129, %3 : vector<16x32xf32>
    %c0_56 = arith.constant 0 : index
    %c0_57 = arith.constant 0 : index
    %c0_58 = arith.constant 0 : index
    %131 = vector.load %arg13[%c0_56, %c0_57, %c0_58] : memref<1x1x32xf32, #tpu.memory_space<vmem>>, vector<1x1x32xf32>
    %132 = vector.shape_cast %131 : vector<1x1x32xf32> to vector<1x32xf32>
    %c0_59 = arith.constant 0 : index
    %c0_60 = arith.constant 0 : index
    %c0_61 = arith.constant 0 : index
    %133 = vector.load %arg14[%c0_59, %c0_60, %c0_61] : memref<1x1x32xf32, #tpu.memory_space<vmem>>, vector<1x1x32xf32>
    %134 = vector.shape_cast %133 : vector<1x1x32xf32> to vector<1x32xf32>
    %cst_62 = arith.constant dense<0.000000e+00> : vector<16xf32>
    %135 = vector.multi_reduction <add>, %130, %cst_62 [1] : vector<16x32xf32> to vector<16xf32>
    %136 = vector.shape_cast %135 : vector<16xf32> to vector<16x1xf32>
    %cst_63 = arith.constant 3.200000e+01 : f32
    %137 = vector.broadcast %cst_63 : f32 to vector<16x1xf32>
    %138 = arith.divf %136, %137 : vector<16x1xf32>
    %139 = vector.broadcast %138 : vector<16x1xf32> to vector<16x32xf32>
    %140 = arith.subf %130, %139 : vector<16x32xf32>
    %141 = arith.mulf %140, %140 : vector<16x32xf32>
    %cst_64 = arith.constant dense<0.000000e+00> : vector<16xf32>
    %142 = vector.multi_reduction <add>, %141, %cst_64 [1] : vector<16x32xf32> to vector<16xf32>
    %143 = vector.shape_cast %142 : vector<16xf32> to vector<16x1xf32>
    %cst_65 = arith.constant 3.200000e+01 : f32
    %144 = vector.broadcast %cst_65 : f32 to vector<16x1xf32>
    %145 = arith.divf %143, %144 : vector<16x1xf32>
    %cst_66 = arith.constant 9.99999996E-13 : f32
    %146 = vector.broadcast %cst_66 : f32 to vector<16x1xf32>
    %147 = arith.addf %145, %146 : vector<16x1xf32>
    %148 = math.rsqrt %147 : vector<16x1xf32>
    %149 = vector.broadcast %148 : vector<16x1xf32> to vector<16x32xf32>
    %150 = arith.mulf %140, %149 : vector<16x32xf32>
    %151 = vector.broadcast %132 : vector<1x32xf32> to vector<16x32xf32>
    %152 = arith.mulf %150, %151 : vector<16x32xf32>
    %153 = vector.broadcast %134 : vector<1x32xf32> to vector<16x32xf32>
    %154 = arith.addf %152, %153 : vector<16x32xf32>
    %155 = arith.truncf %154 : vector<16x32xf32> to vector<16x32xbf16>
    %c0_67 = arith.constant 0 : index
    %c0_68 = arith.constant 0 : index
    %c0_69 = arith.constant 0 : index
    %156 = vector.load %arg15[%c0_67, %c0_68, %c0_69] : memref<1x32x64xbf16, #tpu.memory_space<vmem>>, vector<1x32x64xbf16>
    %157 = vector.shape_cast %156 : vector<1x32x64xbf16> to vector<32x64xbf16>
    %cst_70 = arith.constant dense<0.000000e+00> : vector<16x64xf32>
    %158 = tpu.matmul %155, %157, %cst_70 {dimension_numbers = #tpu.dot_dimension_numbers<[1], [0], [0], [1], [0, 0, 1, 1], [], []>} : vector<16x32xbf16>, vector<32x64xbf16>, vector<16x64xf32> -> vector<16x64xf32>
    %c0_71 = arith.constant 0 : index
    %c0_72 = arith.constant 0 : index
    %c0_73 = arith.constant 0 : index
    %159 = vector.load %arg16[%c0_71, %c0_72, %c0_73] : memref<1x1x64xf32, #tpu.memory_space<vmem>>, vector<1x1x64xf32>
    %160 = vector.shape_cast %159 : vector<1x1x64xf32> to vector<1x64xf32>
    %161 = vector.broadcast %160 : vector<1x64xf32> to vector<16x64xf32>
    %162 = arith.addf %158, %161 : vector<16x64xf32>
    %cst_74 = arith.constant 5.000000e-01 : f32
    %163 = vector.broadcast %cst_74 : f32 to vector<16x64xf32>
    %164 = arith.mulf %163, %162 : vector<16x64xf32>
    %cst_75 = arith.constant 0.707106769 : f32
    %165 = vector.broadcast %cst_75 : f32 to vector<16x64xf32>
    %166 = arith.mulf %162, %165 : vector<16x64xf32>
    %167 = math.absf %166 : vector<16x64xf32>
    %cst_76 = arith.constant 0.327591091 : f32
    %168 = vector.broadcast %cst_76 : f32 to vector<16x64xf32>
    %169 = arith.mulf %168, %167 : vector<16x64xf32>
    %cst_77 = arith.constant 1.000000e+00 : f32
    %170 = vector.broadcast %cst_77 : f32 to vector<16x64xf32>
    %171 = arith.addf %170, %169 : vector<16x64xf32>
    %cst_78 = arith.constant 1.000000e+00 : f32
    %172 = vector.broadcast %cst_78 : f32 to vector<16x64xf32>
    %173 = arith.divf %172, %171 : vector<16x64xf32>
    %cst_79 = arith.constant 1.06140542 : f32
    %174 = vector.broadcast %cst_79 : f32 to vector<16x64xf32>
    %175 = arith.mulf %174, %173 : vector<16x64xf32>
    %cst_80 = arith.constant 1.45315206 : f32
    %176 = vector.broadcast %cst_80 : f32 to vector<16x64xf32>
    %177 = arith.subf %175, %176 : vector<16x64xf32>
    %178 = arith.mulf %177, %173 : vector<16x64xf32>
    %cst_81 = arith.constant 1.42141378 : f32
    %179 = vector.broadcast %cst_81 : f32 to vector<16x64xf32>
    %180 = arith.addf %178, %179 : vector<16x64xf32>
    %181 = arith.mulf %180, %173 : vector<16x64xf32>
    %cst_82 = arith.constant 0.284496725 : f32
    %182 = vector.broadcast %cst_82 : f32 to vector<16x64xf32>
    %183 = arith.subf %181, %182 : vector<16x64xf32>
    %184 = arith.mulf %183, %173 : vector<16x64xf32>
    %cst_83 = arith.constant 0.254829586 : f32
    %185 = vector.broadcast %cst_83 : f32 to vector<16x64xf32>
    %186 = arith.addf %184, %185 : vector<16x64xf32>
    %187 = arith.mulf %186, %173 : vector<16x64xf32>
    %cst_84 = arith.constant 0.000000e+00 : f32
    %188 = vector.broadcast %cst_84 : f32 to vector<16x64xf32>
    %189 = arith.subf %188, %167 : vector<16x64xf32>
    %190 = arith.mulf %189, %167 : vector<16x64xf32>
    %191 = math.exp %190 : vector<16x64xf32>
    %192 = arith.mulf %187, %191 : vector<16x64xf32>
    %cst_85 = arith.constant 1.000000e+00 : f32
    %193 = vector.broadcast %cst_85 : f32 to vector<16x64xf32>
    %194 = arith.subf %193, %192 : vector<16x64xf32>
    %cst_86 = arith.constant 0.000000e+00 : f32
    %195 = vector.broadcast %cst_86 : f32 to vector<16x64xf32>
    %196 = arith.cmpf oge, %166, %195 : vector<16x64xf32>
    %cst_87 = arith.constant 0.000000e+00 : f32
    %197 = vector.broadcast %cst_87 : f32 to vector<16x64xf32>
    %198 = arith.subf %197, %194 : vector<16x64xf32>
    %199 = arith.select %196, %194, %198 : vector<16x64xi1>, vector<16x64xf32>
    %cst_88 = arith.constant 1.000000e+00 : f32
    %200 = vector.broadcast %cst_88 : f32 to vector<16x64xf32>
    %201 = arith.addf %200, %199 : vector<16x64xf32>
    %202 = arith.mulf %164, %201 : vector<16x64xf32>
    %203 = arith.truncf %202 : vector<16x64xf32> to vector<16x64xbf16>
    %c0_89 = arith.constant 0 : index
    %c0_90 = arith.constant 0 : index
    %c0_91 = arith.constant 0 : index
    %204 = vector.load %arg17[%c0_89, %c0_90, %c0_91] : memref<1x64x32xbf16, #tpu.memory_space<vmem>>, vector<1x64x32xbf16>
    %205 = vector.shape_cast %204 : vector<1x64x32xbf16> to vector<64x32xbf16>
    %cst_92 = arith.constant dense<0.000000e+00> : vector<16x32xf32>
    %206 = tpu.matmul %203, %205, %cst_92 {dimension_numbers = #tpu.dot_dimension_numbers<[1], [0], [0], [1], [0, 0, 1, 1], [], []>} : vector<16x64xbf16>, vector<64x32xbf16>, vector<16x32xf32> -> vector<16x32xf32>
    %c0_93 = arith.constant 0 : index
    %c0_94 = arith.constant 0 : index
    %c0_95 = arith.constant 0 : index
    %207 = vector.load %arg18[%c0_93, %c0_94, %c0_95] : memref<1x1x32xf32, #tpu.memory_space<vmem>>, vector<1x1x32xf32>
    %208 = vector.shape_cast %207 : vector<1x1x32xf32> to vector<1x32xf32>
    %209 = vector.broadcast %208 : vector<1x32xf32> to vector<16x32xf32>
    %210 = arith.addf %206, %209 : vector<16x32xf32>
    %211 = arith.addf %210, %154 : vector<16x32xf32>
    %c0_96 = arith.constant 0 : index
    %c0_97 = arith.constant 0 : index
    %c0_98 = arith.constant 0 : index
    %212 = vector.load %arg19[%c0_96, %c0_97, %c0_98] : memref<1x1x32xf32, #tpu.memory_space<vmem>>, vector<1x1x32xf32>
    %213 = vector.shape_cast %212 : vector<1x1x32xf32> to vector<1x32xf32>
    %c0_99 = arith.constant 0 : index
    %c0_100 = arith.constant 0 : index
    %c0_101 = arith.constant 0 : index
    %214 = vector.load %arg20[%c0_99, %c0_100, %c0_101] : memref<1x1x32xf32, #tpu.memory_space<vmem>>, vector<1x1x32xf32>
    %215 = vector.shape_cast %214 : vector<1x1x32xf32> to vector<1x32xf32>
    %cst_102 = arith.constant dense<0.000000e+00> : vector<16xf32>
    %216 = vector.multi_reduction <add>, %211, %cst_102 [1] : vector<16x32xf32> to vector<16xf32>
    %217 = vector.shape_cast %216 : vector<16xf32> to vector<16x1xf32>
    %cst_103 = arith.constant 3.200000e+01 : f32
    %218 = vector.broadcast %cst_103 : f32 to vector<16x1xf32>
    %219 = arith.divf %217, %218 : vector<16x1xf32>
    %220 = vector.broadcast %219 : vector<16x1xf32> to vector<16x32xf32>
    %221 = arith.subf %211, %220 : vector<16x32xf32>
    %222 = arith.mulf %221, %221 : vector<16x32xf32>
    %cst_104 = arith.constant dense<0.000000e+00> : vector<16xf32>
    %223 = vector.multi_reduction <add>, %222, %cst_104 [1] : vector<16x32xf32> to vector<16xf32>
    %224 = vector.shape_cast %223 : vector<16xf32> to vector<16x1xf32>
    %cst_105 = arith.constant 3.200000e+01 : f32
    %225 = vector.broadcast %cst_105 : f32 to vector<16x1xf32>
    %226 = arith.divf %224, %225 : vector<16x1xf32>
    %cst_106 = arith.constant 9.99999996E-13 : f32
    %227 = vector.broadcast %cst_106 : f32 to vector<16x1xf32>
    %228 = arith.addf %226, %227 : vector<16x1xf32>
    %229 = math.rsqrt %228 : vector<16x1xf32>
    %230 = vector.broadcast %229 : vector<16x1xf32> to vector<16x32xf32>
    %231 = arith.mulf %221, %230 : vector<16x32xf32>
    %232 = vector.broadcast %213 : vector<1x32xf32> to vector<16x32xf32>
    %233 = arith.mulf %231, %232 : vector<16x32xf32>
    %234 = vector.broadcast %215 : vector<1x32xf32> to vector<16x32xf32>
    %235 = arith.addf %233, %234 : vector<16x32xf32>
    %c0_107 = arith.constant 0 : index
    %c0_108 = arith.constant 0 : index
    %236 = vector.load %arg21[%c0_107, %c0_108] : memref<16x32xf32, #tpu.memory_space<vmem>>, vector<16x32xf32>
    tpu.vector_store %arg21[%c0_107, %c0_108], %235 {strides = array<i32>} : memref<16x32xf32, #tpu.memory_space<vmem>>, vector<16x32xf32>,
    return
  }
  func.func @transform_0(%arg0: i32) -> (i32, i32) {
    %c0_i32 = arith.constant 0 : i32
    %c0_i32_0 = arith.constant 0 : i32
    %c0_i32_1 = arith.constant 0 : i32
    return %c0_i32, %c0_i32_0 : i32, i32
  }
  func.func @transform_1(%arg0: i32) -> (i32, i32) {
    %c0_i32 = arith.constant 0 : i32
    %c0_i32_0 = arith.constant 0 : i32
    %c0_i32_1 = arith.constant 0 : i32
    return %c0_i32, %c0_i32_0 : i32, i32
  }
  func.func @transform_2(%arg0: i32) -> (i32, i32) {
    %c0_i32 = arith.constant 0 : i32
    %c0_i32_0 = arith.constant 0 : i32
    %c0_i32_1 = arith.constant 0 : i32
    return %c0_i32, %c0_i32_0 : i32, i32
  }
  func.func @transform_3(%arg0: i32) -> (i32, i32) {
    %c0_i32 = arith.constant 0 : i32
    %c0_i32_0 = arith.constant 0 : i32
    %c0_i32_1 = arith.constant 0 : i32
    return %c0_i32, %c0_i32_0 : i32, i32
  }
  func.func @transform_4(%arg0: i32) -> (i32, i32, i32) {
    %c0_i32 = arith.constant 0 : i32
    %c0_i32_0 = arith.constant 0 : i32
    %c0_i32_1 = arith.constant 0 : i32
    return %arg0, %c0_i32, %c0_i32_0 : i32, i32, i32
  }
  func.func @transform_5(%arg0: i32) -> (i32, i32, i32) {
    %c0_i32 = arith.constant 0 : i32
    %c0_i32_0 = arith.constant 0 : i32
    %c0_i32_1 = arith.constant 0 : i32
    return %arg0, %c0_i32, %c0_i32_0 : i32, i32, i32
  }
  func.func @transform_6(%arg0: i32) -> (i32, i32, i32) {
    %c0_i32 = arith.constant 0 : i32
    %c0_i32_0 = arith.constant 0 : i32
    %c0_i32_1 = arith.constant 0 : i32
    return %arg0, %c0_i32, %c0_i32_0 : i32, i32, i32
  }
  func.func @transform_7(%arg0: i32) -> (i32, i32, i32) {
    %c0_i32 = arith.constant 0 : i32
    %c0_i32_0 = arith.constant 0 : i32
    %c0_i32_1 = arith.constant 0 : i32
    return %arg0, %c0_i32, %c0_i32_0 : i32, i32, i32
  }
  func.func @transform_8(%arg0: i32) -> (i32, i32, i32) {
    %c0_i32 = arith.constant 0 : i32
    %c0_i32_0 = arith.constant 0 : i32
    %c0_i32_1 = arith.constant 0 : i32
    return %arg0, %c0_i32, %c0_i32_0 : i32, i32, i32
  }
  func.func @transform_9(%arg0: i32) -> (i32, i32, i32) {
    %c0_i32 = arith.constant 0 : i32
    %c0_i32_0 = arith.constant 0 : i32
    %c0_i32_1 = arith.constant 0 : i32
    return %arg0, %c0_i32, %c0_i32_0 : i32, i32, i32
  }
  func.func @transform_10(%arg0: i32) -> (i32, i32, i32) {
    %c0_i32 = arith.constant 0 : i32
    %c0_i32_0 = arith.constant 0 : i32
    %c0_i32_1 = arith.constant 0 : i32
    return %arg0, %c0_i32, %c0_i32_0 : i32, i32, i32
  }
  func.func @transform_11(%arg0: i32) -> (i32, i32, i32) {
    %c0_i32 = arith.constant 0 : i32
    %c0_i32_0 = arith.constant 0 : i32
    %c0_i32_1 = arith.constant 0 : i32
    return %arg0, %c0_i32, %c0_i32_0 : i32, i32, i32
  }
  func.func @transform_12(%arg0: i32) -> (i32, i32, i32) {
    %c0_i32 = arith.constant 0 : i32
    %c0_i32_0 = arith.constant 0 : i32
    %c0_i32_1 = arith.constant 0 : i32
    return %arg0, %c0_i32, %c0_i32_0 : i32, i32, i32
  }
  func.func @transform_13(%arg0: i32) -> (i32, i32, i32) {
    %c0_i32 = arith.constant 0 : i32
    %c0_i32_0 = arith.constant 0 : i32
    %c0_i32_1 = arith.constant 0 : i32
    return %arg0, %c0_i32, %c0_i32_0 : i32, i32, i32
  }
  func.func @transform_14(%arg0: i32) -> (i32, i32, i32) {
    %c0_i32 = arith.constant 0 : i32
    %c0_i32_0 = arith.constant 0 : i32
    %c0_i32_1 = arith.constant 0 : i32
    return %arg0, %c0_i32, %c0_i32_0 : i32, i32, i32
  }
  func.func @transform_15(%arg0: i32) -> (i32, i32, i32) {
    %c0_i32 = arith.constant 0 : i32
    %c0_i32_0 = arith.constant 0 : i32
    %c0_i32_1 = arith.constant 0 : i32
    return %arg0, %c0_i32, %c0_i32_0 : i32, i32, i32
  }
  func.func @transform_16(%arg0: i32) -> (i32, i32, i32) {
    %c0_i32 = arith.constant 0 : i32
    %c0_i32_0 = arith.constant 0 : i32
    %c0_i32_1 = arith.constant 0 : i32
    return %arg0, %c0_i32, %c0_i32_0 : i32, i32, i32
  }
  func.func @transform_17(%arg0: i32) -> (i32, i32, i32) {
    %c0_i32 = arith.constant 0 : i32
    %c0_i32_0 = arith.constant 0 : i32
    %c0_i32_1 = arith.constant 0 : i32
    return %arg0, %c0_i32, %c0_i32_0 : i32, i32, i32
  }
  func.func @transform_18(%arg0: i32) -> (i32, i32, i32) {
    %c0_i32 = arith.constant 0 : i32
    %c0_i32_0 = arith.constant 0 : i32
    %c0_i32_1 = arith.constant 0 : i32
    return %arg0, %c0_i32, %c0_i32_0 : i32, i32, i32
  }
  func.func @transform_19(%arg0: i32) -> (i32, i32, i32) {
    %c0_i32 = arith.constant 0 : i32
    %c0_i32_0 = arith.constant 0 : i32
    %c0_i32_1 = arith.constant 0 : i32
    return %arg0, %c0_i32, %c0_i32_0 : i32, i32, i32
  }
  func.func @transform_20(%arg0: i32) -> (i32, i32) {
    %c0_i32 = arith.constant 0 : i32
    %c0_i32_0 = arith.constant 0 : i32
    %c0_i32_1 = arith.constant 0 : i32
    return %c0_i32, %c0_i32_0 : i32, i32
  }
}

</mosaic_0001>

<bundles_post_ra>
// kernel: bert_transformer_forward.1
= control target key start
LH: loop header
LB: loop body
LE: loop exit
PB: predicated region body
PF: predicated region fallthrough
CT: control target
= control target key end

     0   :  { %s3070_s0 = inlined_call_operand.vmem [shape: f32[16,16], index: 0, kind: input, shape index: {}]   ;;  %s3071_s1 = inlined_call_operand.vmem [shape: f32[16,32], index: 1, kind: input, shape index: {}]   ;;  %s3072_s2 = inlined_call_operand.vmem [shape: f32[1,32], index: 2, kind: input, shape index: {}]   ;;  %s3073_s3 = inlined_call_operand.vmem [shape: f32[1,32], index: 3, kind: input, shape index: {}]   ;;  %s3074_s4 = inlined_call_operand.vmem [shape: bf16[2,32,32], index: 4, kind: input, shape index: {}]   ;;  %s3075_s5 = inlined_call_operand.vmem [shape: f32[2,1,32], index: 5, kind: input, shape index: {}]   ;;  %s3076_s6 = inlined_call_operand.vmem [shape: bf16[2,32,32], index: 6, kind: input, shape index: {}]   ;;  %s3077_s7 = inlined_call_operand.vmem [shape: f32[2,1,32], index: 7, kind: input, shape index: {}]   ;;  %s3078_s8 = inlined_call_operand.vmem [shape: bf16[2,32,32], index: 8, kind: input, shape index: {}]   ;;  %s3079_s9 = inlined_call_operand.vmem [shape: f32[2,1,32], index: 9, kind: input, shape index: {}]   ;;  %s3080_s10 = inlined_call_operand.vmem [shape: bf16[2,32,32], index: 10, kind: input, shape index: {}]   ;;  %s3081_s11 = inlined_call_operand.vmem [shape: f32[2,1,32], index: 11, kind: input, shape index: {}]   ;;  %s3082_s12 = inlined_call_operand.vmem [shape: f32[2,1,32], index: 12, kind: input, shape index: {}]   ;;  %s3083_s13 = inlined_call_operand.vmem [shape: f32[2,1,32], index: 13, kind: input, shape index: {}]   ;;  %s3084_s14 = inlined_call_operand.vmem [shape: bf16[2,32,64], index: 14, kind: input, shape index: {}]   ;;  %s3085_s15 = inlined_call_operand.vmem [shape: f32[2,1,64], index: 15, kind: input, shape index: {}]   ;;  %s3086_s16 = inlined_call_operand.vmem [shape: bf16[2,64,32], index: 16, kind: input, shape index: {}]   ;;  %s3087_s17 = inlined_call_operand.vmem [shape: f32[2,1,32], index: 17, kind: input, shape index: {}]   ;;  %s3088_s18 = inlined_call_operand.vmem [shape: f32[2,1,32], index: 18, kind: input, shape index: {}]   ;;  %s3089_s19 = inlined_call_operand.vmem [shape: f32[2,1,32], index: 19, kind: input, shape index: {}]   ;;  %s3090_s20 = inlined_call_operand.vmem [shape: f32[16,32], index: 20, kind: output, shape index: {}]  }
   0x1   :  { %3097 = sst [smem:[#allocation4_spill]] %s3070_s0 }
   0x2   :  { %3098 = sst [smem:[#allocation5_spill]] %s3071_s1  ;;  %s2708_s1 = smov 0  }
   0x3   :  { %3099 = sst [smem:[#allocation6_spill]] %s3072_s2 }
   0x4   :  { %3100 = sst [smem:[#allocation7_spill]] %s3073_s3 }
   0x5   :  { %3101 = sst [smem:[#allocation8_spill]] %s3074_s4 }
   0x6   :  { %3102 = sst [smem:[#allocation9_spill]] %s3075_s5 }
   0x7   :  { %3103 = sst [smem:[#allocation10_spill]] %s3076_s6 }
   0x8   :  { %3104 = sst [smem:[#allocation11_spill]] %s3078_s8 }
   0x9   :  { %3105 = sst [smem:[#allocation12_spill]] %s3080_s10 }
   0xa   :  { %3106 = sst [smem:[#allocation13_spill]] %s3083_s13 }
   0xb   :  { %3107 = sst [smem:[#allocation14_spill]] %s3084_s14 }
   0xc   :  { %3108 = sst [smem:[#allocation15_spill]] %s3088_s18 }
   0xd   :  { %3109 = sst [smem:[#allocation16_spill]] %s3089_s19 }
   0xe   :  { %3110 = sst [smem:[#allocation17_spill]] %s3090_s20 }
   0xf LB: > { %3111 = sst [smem:[#allocation2_spill]] %s2596_s1  ;;  %s2286_s22 = sadd.s32 4294967295, %s2596_s1   ;;  %s2596_s1 = sphi %s2708_s1, %s30_s1  }
  0x10   : > { %p2289_p0 = scmp.ge.s32.totalorder %s2596_s1, 1  ;;  %p687_p1 = scmp.lt.s32.totalorder %s2596_s1, 3 }
  0x12   : > { %p688_p2 = pnand %p2289_p0, %p687_p1 }
  0x14   : > { %691 = sbr.rel (%p688_p2) target bundleno = 4103 (0x1007), region = 100 }
  0x1b   : > { %p795_p3 = scmp.lt.s32.totalorder %s2286_s22, 1  ;;  %s3113_s28 = sld [smem:[#allocation8_spill]] }
  0x1c   : > { %s3114_s6 = sld [smem:[#allocation10_spill]]  ;;  %s3115_s8 = sld [smem:[#allocation11_spill]] }
  0x1d   : > { %s2716_s23 = scalar_select %p795_p3, %s2286_s22, 1 }
  0x1e   : > { %s3117_s10 = sld [smem:[#allocation12_spill]]  ;;  %s3119_s14 = sld [smem:[#allocation14_spill]] }
  0x1f   : > { %s2350_s24 = sshll.u32 %s2716_s23, 4  ;;  %s848_s18 = scalar_lea.vmem %s3087_s17, %s2716_s23 }
  0x20   : > { %s3120_s20 = sld [smem:[#allocation15_spill]]  ;;  %p2302_p4 = scmp.ne.s32.totalorder %s2286_s22, 0 }
  0x21   : > { %s2726_s4 = scalar_lea.vmem %s3113_s28, %s2350_s24  ;;  %s3122_s26 = sld [smem:[#allocation5_spill]] (!%p2302_p4)  ;;  %vm864_vm0 = vcmask (!%p2302_p4), 261120  }
  0x22   : > { %s2731_s0 = scalar_lea.vmem %s3114_s6, %s2350_s24  ;;  %s2740_s2 = scalar_lea.vmem %s3115_s8, %s2350_s24 }
  0x23   : > { %3116 = sst [smem:[#allocation3_spill]] %s2740_s2  ;;  %s3124_s1 = sld [smem:[#allocation7_spill]] (!%p2302_p4) }
  0x24   : > { %s2749_s5 = scalar_lea.vmem %s3117_s10, %s2350_s24  ;;  %s2766_s25 = scalar_lea.vmem %s3119_s14, %s2350_s24 }
  0x25   : > { %s2355_s10 = sshll.u32 %s2716_s23, 5  ;;  %s3121_s14 = sld [smem:[#allocation16_spill]] }
  0x26   : > { %s2776_s6 = scalar_lea.vmem %s3086_s16, %s2355_s10  ;;  %s851_s2 = scalar_lea.vmem %s3120_s20, %s2716_s23 }
  0x27   : > { %859 = sbr.rel (%p2302_p4) target bundleno = 358 (0x166), region = 104  ;;  %v860_v0 = vld [vmem:[%s3122_s26] sm:$0xff] (!%p2302_p4)  ;;  %v861_v1 = vld [vmem:[%s3122_s26 + $0x8] sm:$0xff] (!%p2302_p4)  ;;  %s3123_s20 = sld [smem:[#allocation6_spill]] (!%p2302_p4) }
  0x28   : > { %v865_v2 = vsel (!%p2302_p4), %vm864_vm0, %v860_v0, 0.0  ;;  %v868_v3 = vsel (!%p2302_p4), %vm864_vm0, %v861_v1, 0.0  ;;  %s3125_s24 = sld [smem:[#allocation17_spill]] (!%p2302_p4) }
  0x29   : > { %866 = vadd.xlane.f32.xlu0 (!%p2302_p4), %v865_v2  ;;  %v2304_v23 = vld [vmem:[%s3124_s1] ss:$0 sm:$0xff] (!%p2302_p4) }
  0x2b   : > { %s854_s13 = scalar_lea.vmem %s3121_s14, %s2716_s23 }
  0x2d   : > { %869 = vadd.xlane.f32.xlu0 (!%p2302_p4), %v868_v3  ;;  %v2303_v21 = vld [vmem:[%s3123_s20] ss:$0 sm:$0xff] (!%p2302_p4) }
  0xb6   : > { %v867_v4 = vpop.xlane.xlu0 %866 }
  0xb7   : > { %v872_v5 = vmul.f32 0.03125, %v867_v4 }
  0xb9   : > { %v874_v6 = vsub.f32 %v860_v0, %v872_v5 }
  0xba   : > { %v870_v7 = vpop.xlane.xlu0 %869 }
  0xbb   : > { %v873_v8 = vmul.f32 0.03125, %v870_v7  ;;  %v876_v9 = vmul.f32 %v874_v6, %v874_v6 }
  0xbd   : > { %v875_v10 = vsub.f32 %v861_v1, %v873_v8  ;;  %v878_v11 = vsel %vm864_vm0, %v876_v9, 0.0 }
  0xbe   : > { %879 = vadd.xlane.f32.xlu1 %v878_v11 }
  0xbf   : > { %v877_v12 = vmul.f32 %v875_v10, %v875_v10 }
  0xc1   : > { %v881_v13 = vsel %vm864_vm0, %v877_v12, 0.0 }
  0xc2   : > { %882 = vadd.xlane.f32.xlu1 %v881_v13 }
 0x14b   : > { %v880_v14 = vpop.xlane.xlu1 %879 }
 0x14c   : > { %v884_v15 = vmul.f32 0.03125, %v880_v14 }
 0x14e   : > { %v886_v16 = vadd.f32 1e-12, %v884_v15 }
 0x14f   : > { %v883_v17 = vpop.xlane.xlu1 %882 }
 0x150   : > { %2526 = vrsqrt.f32 %v886_v16  ;;  %v885_v18 = vmul.f32 0.03125, %v883_v17 }
 0x152   : > { %v887_v19 = vadd.f32 1e-12, %v885_v18 }
 0x154   : > { %2528 = vrsqrt.f32 %v887_v19 }
 0x15a   : > { %v2527_v20 = vpop.eup %2526 }
 0x15b   : > { %v890_v22 = vmul.f32 %v2527_v20, %v874_v6 }
 0x15d   : > { %v898_v24 = vmul.f32 %v2303_v21, %v890_v22 }
 0x15e   : > { %v2529_v25 = vpop.eup %2528 }
 0x15f   : > { %v906_v26 = vadd.f32 %v2304_v23, %v898_v24  ;;  %v891_v27 = vmul.f32 %v2529_v25, %v875_v10 }
 0x161   : > { %908 = vst.msk [vmem:[%s3125_s24] sm:$0xff] %vm864_vm0, %v906_v26  ;;  %v899_v28 = vmul.f32 %v2303_v21, %v891_v27 }
 0x163   : > { %v907_v29 = vadd.f32 %v2304_v23, %v899_v28 }
 0x165   : > { %909 = vst.msk [vmem:[%s3125_s24 + $0x8] sm:$0xff] %vm864_vm0, %v907_v29 }
 0x166 PF: > { %v2530_v30 = vld [vmem:[%s2726_s4] sm:$0xff]   ;;  %v2598_v31 = vmov 0.0   ;;  %v2531_v32 = vld [vmem:[%s2726_s4 + $0x8] sm:$0xff]   ;;  %vm2599_vm1 = vmmov 0   ;;  %s3126_s29 = sld [smem:[#allocation17_spill]]  ;;  %vm936_vm2 = vcmask 261120   ;;  %s3129_s21 = scalar_lea.vmem %s3077_s7, %s2716_s23 }
 0x167   : > { %2397 = vmatprep.subr.bf16.mxu1 %v2598_v31  ;;  %2413 = vmatprep.subr.bf16.mxu0 %v2598_v31  ;;  %v2532_v35 = vld [vmem:[%s2731_s0] sm:$0xff]   ;;  %v2533_v37 = vld [vmem:[%s2731_s0 + $0x8] sm:$0xff]   ;;  %s3127_s22 = sld [smem:[#allocation9_spill]]  ;;  %s3130_s19 = sld [smem:[#allocation3_spill]]  ;;  %vm1114_vm3 = vcmask 64512   ;;  %vm1162_vm4 = vcmask 130048  }
 0x168   : > { %2398 = vmatpush3.bf16.msra.mxu1 %v2530_v30  ;;  %2401 = vmatprep.mubr.msk.bf16.mxu1 %vm2599_vm1, %v2598_v31  ;;  %v2309_v46 = vld [vmem:[%s3129_s21] ss:$0 sm:$0xff]  ;;  %s2600_s24 = smov 120   ;;  %s3131_s28 = sld [smem:[#allocation4_spill]]  ;;  %vm1361_vm5 = vcmask 1043456   ;;  %vm2015_vm8 = vcmask 523264  }
 0x169   : > { %2399 = vmatprep.subr.bf16.mxu1 %v2598_v31  ;;  %2417 = vmatprep.mubr.msk.bf16.mxu0 %vm2599_vm1, %v2598_v31  ;;  %s2601_s14 = smov 112   ;;  %s3133_s1 = scalar_lea.vmem %s3081_s11, %s2716_s23 }
 0x16a   : > { %s3135_s27 = sld [smem:[#allocation13_spill]]  ;;  %s3137_s4 = scalar_lea.vmem %s3085_s15, %s2716_s23 }
 0x16c   : > { %v2823_v33 = vld [vmem:[%s3126_s29] sm:$0xff]  ;;  %v2828_v34 = vld [vmem:[%s3126_s29 + $0x8] sm:$0xff]  ;;  %2400 = vmatpush3.bf16.msra.mxu1 %v2531_v32 }
 0x16d   : > { %v912_v36 = vpack.c.bf16 %v2828_v34, %v2823_v33  ;;  %2405 = vmatprep.subr.bf16.mxu1 %v2598_v31  ;;  %s3128_s30 = scalar_lea.vmem %s3127_s22, %s2716_s23  ;;  %v2534_v55 = vld [vmem:[%s3130_s19] sm:$0xff]   ;;  %v2535_v56 = vld [vmem:[%s3130_s19 + $0x8] sm:$0xff]   ;;  %s3132_s22 = scalar_lea.vmem %s3079_s9, %s2716_s23 }
 0x16e   : > { %v2305_v38 = vld [vmem:[%s3128_s30] ss:$0 sm:$0xff]  ;;  %2414 = vmatpush3.bf16.msra.mxu0 %v2534_v55  ;;  %v2891_v62 = vld [vmem:[%s3131_s28 + $0x8] sm:$0xff]  ;;  %s2602_s30 = smov 104  }
 0x16f   : > { %2402 = vmatmul.mubr.msk.bf16.vlgmr.msra.gmra.mrb[0].mxu1 %vm936_vm2, %v912_v36  ;;  %2415 = vmatprep.subr.bf16.mxu0 %v2598_v31  ;;  %v2886_v60 = vld [vmem:[%s3131_s28] sm:$0xff] }
 0x170   : > { %2406 = vmatpush3.bf16.msra.mxu1 %v2532_v35  ;;  %2409 = vmatprep.mubr.msk.bf16.mxu1 %vm2599_vm1, %v2598_v31  ;;  %v2313_v20 = vld [vmem:[%s3132_s22] ss:$0 sm:$0xff]  ;;  %s3136_s10 = scalar_lea.vmem %s3135_s27, %s2716_s23 }
 0x171   : > { %2407 = vmatprep.subr.bf16.mxu1 %v2598_v31 }
 0x172   : > { %2416 = vmatpush3.bf16.msra.mxu0 %v2535_v56 }
 0x173   : > { %2427 = vmatprep.subr.bf16.mxu0 %v2598_v31 }
 0x174   : > { %2408 = vmatpush3.bf16.msra.mxu1 %v2533_v37 }
 0x175   : > { %2421 = vmatprep.subr.bf16.mxu1 %v2598_v31  ;;  %2418 = vmatmul.mubr.msk.bf16.vlgmr.msra.gmra.mrb[0].mxu0 %vm936_vm2, %v912_v36 }
 0x176   : > { %2429 = vmatprep.mubr.msk.bf16.mxu0 %vm2599_vm1, %v2598_v31 }
 0x177   : > { %2410 = vmatmul.mubr.msk.bf16.vlgmr.msra.gmra.mrb[4].mxu1 %vm936_vm2, %v912_v36 }
 0x178   : > { %2423 = vmatprep.mubr.msk.bf16.mxu1 %vm2599_vm1, %v2598_v31 }
 0x242   : > { %v974_v39 = vpop.f32.mrb[0].mxu1 }
 0x243   : > { %v2403_v40 = vpop.f32.mrb[1].mxu1  ;;  %v975_v42 = vadd.f32 %v2305_v38, %v974_v39 }
 0x244   : > { %v977_v41 = vpop.f32.mrb[2].mxu1 }
 0x245   : > { %v978_v43 = vadd.f32 %v2305_v38, %v977_v41  ;;  %v2404_v44 = vpop.f32.mrb[3].mxu1 }
 0x247   : > { %v2851_v45 = vpack.c.bf16 %v978_v43, %v975_v42 }
 0x248   : > { %v1102_v21 = vpop.f32.mrb[0].mxu0 }
 0x249   : > { %v1103_v22 = vadd.f32 %v2313_v20, %v1102_v21  ;;  %v2419_v23 = vpop.f32.mrb[1].mxu0 }
 0x24a   : > { %v1038_v47 = vpop.f32.mrb[4].mxu1  ;;  %v1105_v24 = vpop.f32.mrb[2].mxu0 }
 0x24b   : > { %v2411_v48 = vpop.f32.mrb[5].mxu1  ;;  %v1039_v50 = vadd.f32 %v2309_v46, %v1038_v47  ;;  %v1106_v25 = vadd.f32 %v2313_v20, %v1105_v24  ;;  %v2420_v26 = vpop.f32.mrb[3].mxu0 }
 0x24c   : > { %v1041_v49 = vpop.f32.mrb[6].mxu1 }
 0x24d   : > { %v1042_v51 = vadd.f32 %v2309_v46, %v1041_v49  ;;  %v2412_v52 = vpop.f32.mrb[7].mxu1  ;;  %v2908_v27 = vpack.c.bf16 %v1106_v25, %v1103_v22 }
 0x24f   : > { %v2858_v53 = vpack.c.bf16 %v1042_v51, %v1039_v50  ;;  %2428 = vmatpush3.bf16.msra.mxu0 %v2908_v27 }
 0x250   : > { %2439 = vmatprep.subr.bf16.mxu0 %v2598_v31 }
 0x251   : > { %1236 = vrot.lane.b32.xlu0 %v2858_v53, %s2600_s24  ;;  %v1119_v54 = vsel %vm1114_vm3, %v2858_v53, 0 }
 0x252   : > { %2422 = vmatpush3.bf16.xpose.msra.mxu1 %v1119_v54  ;;  %v1357_v54 = vld [vmem:[%s2749_s5 + $0x4] sm:$0xf] }
 0x253   : > { %2433 = vmatprep.subr.bf16.mxu1 %v2598_v31  ;;  %v1363_v55 = vsel %vm1361_vm5, %v1357_v54, 0 }
 0x255   : > { %1233 = vrot.lane.b32.xlu0 %v2851_v45, %s2600_s24 }
 0x259   : > { %2424 = vmatmul.mubr.msk.bf16.vlgmr.msra.gmra.mrb[8].mxu1 %vm1114_vm3, %v2851_v45 }
 0x25a   : > { %2435 = vmatprep.mubr.msk.bf16.mxu1 %vm2599_vm1, %v2598_v31 }
 0x2c3   : > { %v1237_v57 = vpop.permute.xlu0 %1236 }
 0x2c4   : > { %v1242_v58 = vsel %vm1114_vm3, %v1237_v57, 0 }
 0x2c5   : > { %2434 = vmatpush3.bf16.xpose.msra.mxu1 %v1242_v58 }
 0x2c6   : > { %2445 = vmatprep.subr.bf16.mxu1 %v2598_v31 }
 0x2c7   : > { %v1234_v59 = vpop.permute.xlu0 %1233 }
 0x2cc   : > { %2436 = vmatmul.mubr.msk.bf16.vlgmr.msra.gmra.mrb[12].mxu1 %vm1114_vm3, %v1234_v59 }
 0x2cd   : > { %2447 = vmatprep.mubr.msk.bf16.mxu1 %vm2599_vm1, %v2598_v31  ;;  %2446 = vmatpush3.bf16.msra.mxu1 %v1363_v55 }
 0x2ce   : > { %2457 = vmatprep.subr.bf16.mxu1 %v2598_v31 }
 0x32c   : > { %v1155_v61 = vpop.f32.mrb[8].mxu1 }
 0x32d   : > { %v1156_v63 = vadd.f32 %v1155_v61, %v2886_v60  ;;  %v2425_v0 = vpop.f32.mrb[9].mxu1 }
 0x32e   : > { %v1158_v1 = vpop.f32.mrb[10].mxu1 }
 0x32f   : > { %v1159_v2 = vadd.f32 %v1158_v1, %v2891_v62  ;;  %v2426_v3 = vpop.f32.mrb[11].mxu1  ;;  %v1163_v4 = vsel %vm1162_vm4, %v1156_v63, -inf }
 0x330   : > { %1164 = vmax.xlane.f32.xlu1 %v1163_v4 }
 0x331   : > { %v1166_v5 = vsel %vm1162_vm4, %v1159_v2, -inf }
 0x334   : > { %1167 = vmax.xlane.f32.xlu1 %v1166_v5 }
 0x39f   : > { %v1278_v6 = vpop.f32.mrb[12].mxu1 }
 0x3a0   : > { %v1279_v7 = vadd.f32 %v1278_v6, %v2886_v60  ;;  %v2437_v8 = vpop.f32.mrb[13].mxu1 }
 0x3a1   : > { %v1281_v9 = vpop.f32.mrb[14].mxu1 }
 0x3a2   : > { %v1282_v10 = vadd.f32 %v1281_v9, %v2891_v62  ;;  %v2438_v11 = vpop.f32.mrb[15].mxu1  ;;  %v1285_v12 = vsel %vm1162_vm4, %v1279_v7, -inf }
 0x3a3   : > { %1286 = vmax.xlane.f32.xlu0 %v1285_v12 }
 0x3a4   : > { %v1288_v13 = vsel %vm1162_vm4, %v1282_v10, -inf }
 0x3a5   : > { %1289 = vmax.xlane.f32.xlu1 %v1288_v13 }
 0x3b9   : > { %1455 = vrot.lane.b32.xlu0 %v2858_v53, %s2601_s14 }
 0x3bd   : > { %v1165_v14 = vpop.xlane.xlu1 %1164 }
 0x3be   : > { %v1169_v15 = vsub.f32 %v1156_v63, %v1165_v14  ;;  %v1231_v63 = vld [vmem:[%s2749_s5] sm:$0xf] }
 0x3bf   : > { %v1410_v3 = vsel %vm1361_vm5, %v1231_v63, 0 }
 0x3c0   : > { %v1171_v16 = vmul.f32 1.442695, %v1169_v15 }
 0x3c1   : > { %v1168_v17 = vpop.xlane.xlu1 %1167 }
 0x3c2   : > { %2542 = vpow2.f32 %v1171_v16  ;;  %v1170_v18 = vsub.f32 %v1159_v2, %v1168_v17 }
 0x3c4   : > { %v1173_v19 = vmul.f32 1.442695, %v1170_v18 }
 0x3c6   : > { %2544 = vpow2.f32 %v1173_v19 }
 0x3cc   : > { %v2543_v28 = vpop.eup %2542 }
 0x3cd   : > { %v1175_v29 = vsel %vm1162_vm4, %v2543_v28, 0.0 }
 0x3ce   : > { %1176 = vadd.xlane.f32.xlu1 %v1175_v29 }
 0x3d0   : > { %v2545_v30 = vpop.eup %2544 }
 0x3d1   : > { %v1178_v32 = vsel %vm1162_vm4, %v2545_v30, 0.0 }
 0x3d2   : > { %1179 = vadd.xlane.f32.xlu1 %v1178_v32 }
 0x430   : > { %v1287_v35 = vpop.xlane.xlu0 %1286 }
 0x431   : > { %v1291_v36 = vsub.f32 %v1279_v7, %v1287_v35 }
 0x432   : > { %v1290_v37 = vpop.xlane.xlu1 %1289 }
 0x433   : > { %v1293_v38 = vmul.f32 1.442695, %v1291_v36  ;;  %v1292_v39 = vsub.f32 %v1282_v10, %v1290_v37 }
 0x434   : > { %v1456_v11 = vpop.permute.xlu0 %1455 }
 0x435   : > { %2546 = vpow2.f32 %v1293_v38  ;;  %v1295_v40 = vmul.f32 1.442695, %v1292_v39  ;;  %v1461_v15 = vsel %vm1114_vm3, %v1456_v11, 0 }
 0x437   : > { %2548 = vpow2.f32 %v1295_v40 }
 0x43f   : > { %v2547_v41 = vpop.eup %2546 }
 0x440   : > { %v1297_v42 = vsel %vm1162_vm4, %v2547_v41, 0.0 }
 0x441   : > { %v2549_v43 = vpop.eup %2548  ;;  %1298 = vadd.xlane.f32.xlu1 %v1297_v42 }
 0x442   : > { %v1300_v44 = vsel %vm1162_vm4, %v2549_v43, 0.0 }
 0x445   : > { %1301 = vadd.xlane.f32.xlu1 %v1300_v44 }
 0x456   : > { %1309 = vrot.lane.b32.xlu1 %v2908_v27, %s2600_s24 }
 0x45a   : > { %1453 = vrot.lane.b32.xlu1 %v2851_v45, %s2601_s14 }
 0x45b   : > { %v1177_v46 = vpop.xlane.xlu1 %1176 }
 0x45c   : > { %2550 = vrcp.f32 %v1177_v46 }
 0x45f   : > { %v1180_v47 = vpop.xlane.xlu1 %1179 }
 0x460   : > { %2552 = vrcp.f32 %v1180_v47 }
 0x466   : > { %v2551_v48 = vpop.eup %2550 }
 0x467   : > { %v1183_v50 = vmul.f32 %v2551_v48, %v2543_v28 }
 0x46a   : > { %v2553_v49 = vpop.eup %2552 }
 0x46b   : > { %v1184_v51 = vmul.f32 %v2553_v49, %v2545_v30 }
 0x46d   : > { %v1185_v52 = vpack.c.bf16 %v1184_v51, %v1183_v50 }
 0x46f   : > { %2430 = vmatmul.mubr.msk.bf16.vlgmr.msra.gmra.mrb[4].mxu0 %vm1162_vm4, %v1185_v52 }
 0x470   : > { %2441 = vmatprep.mubr.msk.bf16.mxu0 %vm2599_vm1, %v2598_v31 }
 0x4ce   : > { %v1299_v56 = vpop.xlane.xlu1 %1298 }
 0x4cf   : > { %2554 = vrcp.f32 %v1299_v56 }
 0x4d2   : > { %v1302_v57 = vpop.xlane.xlu1 %1301 }
 0x4d3   : > { %2556 = vrcp.f32 %v1302_v57 }
 0x4d6   : > { %v1310_v58 = vpop.permute.xlu1 %1309 }
 0x4d7   : > { %2440 = vmatpush3.bf16.msra.mxu0 %v1310_v58 }
 0x4d8   : > { %2451 = vmatprep.subr.bf16.mxu0 %v2598_v31 }
 0x4d9   : > { %v2555_v59 = vpop.eup %2554 }
 0x4da   : > { %v1305_v0 = vmul.f32 %v2555_v59, %v2547_v41  ;;  %v1454_v16 = vpop.permute.xlu1 %1453 }
 0x4dd   : > { %v2557_v61 = vpop.eup %2556 }
 0x4de   : > { %v1306_v1 = vmul.f32 %v2557_v61, %v2549_v43 }
 0x4e0   : > { %v1307_v2 = vpack.c.bf16 %v1306_v1, %v1305_v0 }
 0x4e2   : > { %2442 = vmatmul.mubr.msk.bf16.vlgmr.msra.gmra.mrb[8].mxu0 %vm1162_vm4, %v1307_v2 }
 0x4e3   : > { %2452 = vmatpush3.bf16.msra.mxu0 %v1410_v3  ;;  %2453 = vmatprep.mubr.msk.bf16.mxu0 %vm2599_vm1, %v2598_v31 }
 0x4e4   : > { %2463 = vmatprep.subr.bf16.mxu0 %v2598_v31 }
 0x542   : > { %v1223_v4 = vpop.f32.mrb[4].mxu0 }
 0x543   : > { %v2431_v5 = vpop.f32.mrb[5].mxu0 }
 0x544   : > { %v1226_v6 = vpop.f32.mrb[6].mxu0 }
 0x545   : > { %v1230_v7 = vpack.c.bf16 %v1226_v6, %v1223_v4  ;;  %v2432_v8 = vpop.f32.mrb[7].mxu0 }
 0x547   : > { %2454 = vmatmul.mubr.msk.bf16.vlgmr.msra.gmra.mrb[12].mxu0 %vm1114_vm3, %v1230_v7 }
 0x548   : > { %2465 = vmatprep.mubr.msk.bf16.mxu0 %vm2599_vm1, %v2598_v31 }
 0x5b5   : > { %v1349_v9 = vpop.f32.mrb[8].mxu0 }
 0x5b6   : > { %v2443_v10 = vpop.f32.mrb[9].mxu0 }
 0x5b7   : > { %v1352_v12 = vpop.f32.mrb[10].mxu0 }
 0x5b8   : > { %v1356_v13 = vpack.c.bf16 %v1352_v12, %v1349_v9  ;;  %v2444_v14 = vpop.f32.mrb[11].mxu0 }
 0x5ba   : > { %2448 = vmatmul.mubr.msk.bf16.vlgmr.msra.gmra.mrb[16].mxu1 %vm1114_vm3, %v1356_v13 }
 0x5bb   : > { %2458 = vmatpush3.bf16.xpose.msra.mxu1 %v1461_v15  ;;  %2459 = vmatprep.mubr.msk.bf16.mxu1 %vm2599_vm1, %v2598_v31 }
 0x5bc   : > { %2469 = vmatprep.subr.bf16.mxu1 %v2598_v31 }
 0x5c2   : > { %2460 = vmatmul.mubr.msk.bf16.vlgmr.msra.gmra.mrb[20].mxu1 %vm1114_vm3, %v1454_v16 }
 0x5c3   : > { %2471 = vmatprep.mubr.msk.bf16.mxu1 %vm2599_vm1, %v2598_v31 }
 0x61a   : > { %v1446_v17 = vpop.f32.mrb[12].mxu0 }
 0x61b   : > { %v2455_v18 = vpop.f32.mrb[13].mxu0 }
 0x61c   : > { %v1449_v19 = vpop.f32.mrb[14].mxu0 }
 0x61d   : > { %v2456_v20 = vpop.f32.mrb[15].mxu0 }
 0x68d   : > { %v1399_v21 = vpop.f32.mrb[16].mxu1 }
 0x68e   : > { %v2944_v22 = vadd.f32 %v1446_v17, %v1399_v21  ;;  %v2449_v23 = vpop.f32.mrb[17].mxu1  ;;  %v1747_v21 = vld [vmem:[%s2749_s5 + $0xc] sm:$0xf] }
 0x68f   : > { %v1402_v24 = vpop.f32.mrb[18].mxu1  ;;  %v1752_v23 = vsel %vm1361_vm5, %v1747_v21, 0  ;;  %v2539_v21 = vld [vmem:[%s2776_s6 + $0x8] sm:$0xff]  }
 0x690   : > { %v2946_v25 = vadd.f32 %v1449_v19, %v1402_v24  ;;  %v2450_v26 = vpop.f32.mrb[19].mxu1 }
 0x695   : > { %v1497_v28 = vpop.f32.mrb[20].mxu1 }
 0x696   : > { %v1498_v29 = vadd.f32 %v1497_v28, %v2886_v60  ;;  %v2461_v30 = vpop.f32.mrb[21].mxu1 }
 0x697   : > { %v1500_v32 = vpop.f32.mrb[22].mxu1 }
 0x698   : > { %v1501_v35 = vadd.f32 %v1500_v32, %v2891_v62  ;;  %v2462_v36 = vpop.f32.mrb[23].mxu1  ;;  %v1504_v37 = vsel %vm1162_vm4, %v1498_v29, -inf }
 0x699   : > { %1505 = vmax.xlane.f32.xlu1 %v1504_v37 }
 0x69a   : > { %v1507_v38 = vsel %vm1162_vm4, %v1501_v35, -inf }
 0x69b   : > { %1508 = vmax.xlane.f32.xlu0 %v1507_v38 }
 0x6b1   : > { %1527 = vrot.lane.b32.xlu0 %v2908_v27, %s2601_s14 }
 0x726   : > { %v1506_v39 = vpop.xlane.xlu1 %1505 }
 0x727   : > { %v1510_v40 = vsub.f32 %v1498_v29, %v1506_v39 }
 0x728   : > { %v1509_v41 = vpop.xlane.xlu0 %1508 }
 0x729   : > { %v1512_v42 = vmul.f32 1.442695, %v1510_v40  ;;  %v1511_v43 = vsub.f32 %v1501_v35, %v1509_v41 }
 0x72b   : > { %2558 = vpow2.f32 %v1512_v42  ;;  %v1514_v44 = vmul.f32 1.442695, %v1511_v43 }
 0x72c   : > { %v1528_v46 = vpop.permute.xlu0 %1527 }
 0x72d   : > { %2560 = vpow2.f32 %v1514_v44  ;;  %2464 = vmatpush3.bf16.msra.mxu0 %v1528_v46 }
 0x72e   : > { %2475 = vmatprep.subr.bf16.mxu0 %v2598_v31 }
 0x735   : > { %v2559_v47 = vpop.eup %2558 }
 0x736   : > { %v1516_v48 = vsel %vm1162_vm4, %v2559_v47, 0.0 }
 0x737   : > { %v2561_v49 = vpop.eup %2560  ;;  %1517 = vadd.xlane.f32.xlu1 %v1516_v48 }
 0x738   : > { %v1519_v50 = vsel %vm1162_vm4, %v2561_v49, 0.0 }
 0x73b   : > { %1520 = vadd.xlane.f32.xlu1 %v1519_v50 }
 0x74c   : > { %1627 = vrot.lane.b32.xlu1 %v2858_v53, %s2602_s30  ;;  %v1575_v53 = vld [vmem:[%s2749_s5 + $0x8] sm:$0xf] }
 0x74d   : > { %v1580_v63 = vsel %vm1361_vm5, %v1575_v53, 0 }
 0x74e   : > { %2470 = vmatpush3.bf16.msra.mxu1 %v1580_v63 }
 0x74f   : > { %2481 = vmatprep.subr.bf16.mxu1 %v2598_v31 }
 0x750   : > { %1625 = vrot.lane.b32.xlu1 %v2851_v45, %s2602_s30 }
 0x7c4   : > { %v1518_v51 = vpop.xlane.xlu1 %1517 }
 0x7c5   : > { %2562 = vrcp.f32 %v1518_v51 }
 0x7c8   : > { %v1521_v52 = vpop.xlane.xlu1 %1520 }
 0x7c9   : > { %2564 = vrcp.f32 %v1521_v52 }
 0x7cc   : > { %v1628_v58 = vpop.permute.xlu1 %1627 }
 0x7cd   : > { %v1633_v61 = vsel %vm1114_vm3, %v1628_v58, 0 }
 0x7cf   : > { %v2563_v54 = vpop.eup %2562 }
 0x7d0   : > { %v1524_v56 = vmul.f32 %v2563_v54, %v2559_v47  ;;  %v1626_v45 = vpop.permute.xlu1 %1625  ;;  %v2329_v47 = vld [vmem:[%s3133_s1] ss:$0 sm:$0xff] }
 0x7d3   : > { %v2565_v55 = vpop.eup %2564 }
 0x7d4   : > { %v1525_v57 = vmul.f32 %v2565_v55, %v2561_v49 }
 0x7d6   : > { %v1526_v59 = vpack.c.bf16 %v1525_v57, %v1524_v56 }
 0x7d8   : > { %2466 = vmatmul.mubr.msk.bf16.vlgmr.msra.gmra.mrb[16].mxu0 %vm1162_vm4, %v1526_v59 }
 0x7d9   : > { %2476 = vmatpush3.bf16.xpose.msra.mxu0 %v1633_v61  ;;  %2477 = vmatprep.mubr.msk.bf16.mxu0 %vm2599_vm1, %v2598_v31 }
 0x7da   : > { %2487 = vmatprep.subr.bf16.mxu0 %v2598_v31 }
 0x7e0   : > { %2478 = vmatmul.mubr.msk.bf16.vlgmr.msra.gmra.mrb[20].mxu0 %vm1114_vm3, %v1626_v45 }
 0x7e1   : > { %2489 = vmatprep.mubr.msk.bf16.mxu0 %vm2599_vm1, %v2598_v31  ;;  %2488 = vmatpush3.bf16.msra.mxu0 %v1752_v23  ;;  %v2540_v23 = vld [vmem:[%s2776_s6 + $0x10] sm:$0xff]  }
 0x7e2   : > { %2501 = vmatprep.subr.bf16.mxu0 %v2598_v31 }
 0x8ab   : > { %v1567_v0 = vpop.f32.mrb[16].mxu0 }
 0x8ac   : > { %v2467_v1 = vpop.f32.mrb[17].mxu0 }
 0x8ad   : > { %v1570_v2 = vpop.f32.mrb[18].mxu0 }
 0x8ae   : > { %v1574_v3 = vpack.c.bf16 %v1570_v2, %v1567_v0  ;;  %v2468_v4 = vpop.f32.mrb[19].mxu0 }
 0x8b0   : > { %2472 = vmatmul.mubr.msk.bf16.vlgmr.msra.gmra.mrb[24].mxu1 %vm1114_vm3, %v1574_v3 }
 0x8b1   : > { %2483 = vmatprep.mubr.msk.bf16.mxu1 %vm2599_vm1, %v2598_v31 }
 0x8b3   : > { %v1669_v5 = vpop.f32.mrb[20].mxu0 }
 0x8b4   : > { %v1670_v6 = vadd.f32 %v1669_v5, %v2886_v60  ;;  %v2479_v7 = vpop.f32.mrb[21].mxu0  ;;  %v2537_v5 = vld [vmem:[%s2766_s25 + $0x8] sm:$0xff]  }
 0x8b5   : > { %v1672_v8 = vpop.f32.mrb[22].mxu0 }
 0x8b6   : > { %v1673_v9 = vadd.f32 %v1672_v8, %v2891_v62  ;;  %v2480_v10 = vpop.f32.mrb[23].mxu0  ;;  %v1676_v11 = vsel %vm1162_vm4, %v1670_v6, -inf }
 0x8b7   : > { %1677 = vmax.xlane.f32.xlu0 %v1676_v11 }
 0x8b8   : > { %v1679_v12 = vsel %vm1162_vm4, %v1673_v9, -inf }
 0x8b9   : > { %1680 = vmax.xlane.f32.xlu1 %v1679_v12 }
 0x8ca   : > { %1699 = vrot.lane.b32.xlu1 %v2908_v27, %s2602_s30 }
 0x944   : > { %v1678_v13 = vpop.xlane.xlu0 %1677 }
 0x945   : > { %v1682_v14 = vsub.f32 %v1670_v6, %v1678_v13 }
 0x946   : > { %v1681_v15 = vpop.xlane.xlu1 %1680 }
 0x947   : > { %v1684_v16 = vmul.f32 1.442695, %v1682_v14  ;;  %v1683_v60 = vsub.f32 %v1673_v9, %v1681_v15 }
 0x949   : > { %2566 = vpow2.f32 %v1684_v16  ;;  %v1686_v17 = vmul.f32 1.442695, %v1683_v60 }
 0x94a   : > { %v1700_v18 = vpop.permute.xlu1 %1699 }
 0x94b   : > { %2568 = vpow2.f32 %v1686_v17  ;;  %2482 = vmatpush3.bf16.msra.mxu1 %v1700_v18  ;;  %v2331_v17 = vld [vmem:[%s3136_s10] ss:$0 sm:$0xff] }
 0x94c   : > { %2493 = vmatprep.subr.bf16.mxu1 %v2598_v31 }
 0x953   : > { %v2567_v62 = vpop.eup %2566 }
 0x954   : > { %v1688_v19 = vsel %vm1162_vm4, %v2567_v62, 0.0 }
 0x955   : > { %v2569_v20 = vpop.eup %2568  ;;  %1689 = vadd.xlane.f32.xlu0 %v1688_v19 }
 0x956   : > { %v1691_v27 = vsel %vm1162_vm4, %v2569_v20, 0.0 }
 0x959   : > { %1692 = vadd.xlane.f32.xlu0 %v1691_v27  ;;  %v2538_v27 = vld [vmem:[%s2776_s6] sm:$0xff]  }
 0x983   : > { %v1616_v24 = vpop.f32.mrb[24].mxu1 }
 0x984   : > { %v1623_v26 = vadd.f32 %v1616_v24, %v2944_v22  ;;  %v2473_v28 = vpop.f32.mrb[25].mxu1  ;;  %v2541_v24 = vld [vmem:[%s2776_s6 + $0x18] sm:$0xff]  }
 0x985   : > { %v1619_v29 = vpop.f32.mrb[26].mxu1 }
 0x986   : > { %v1624_v30 = vadd.f32 %v1619_v29, %v2946_v25  ;;  %v2474_v32 = vpop.f32.mrb[27].mxu1 }
 0x9e2   : > { %v1690_v35 = vpop.xlane.xlu0 %1689 }
 0x9e3   : > { %2570 = vrcp.f32 %v1690_v35 }
 0x9e6   : > { %v1693_v36 = vpop.xlane.xlu0 %1692 }
 0x9e7   : > { %2572 = vrcp.f32 %v1693_v36 }
 0x9ed   : > { %v2571_v37 = vpop.eup %2570 }
 0x9ee   : > { %v1696_v39 = vmul.f32 %v2571_v37, %v2567_v62 }
 0x9f1   : > { %v2573_v38 = vpop.eup %2572 }
 0x9f2   : > { %v1697_v40 = vmul.f32 %v2573_v38, %v2569_v20 }
 0x9f4   : > { %v1698_v41 = vpack.c.bf16 %v1697_v40, %v1696_v39 }
 0x9f6   : > { %2484 = vmatmul.mubr.msk.bf16.vlgmr.msra.gmra.mrb[28].mxu1 %vm1162_vm4, %v1698_v41 }
 0x9f7   : > { %2497 = vmatprep.mubr.msk.bf16.mxu1 %vm2599_vm1, %v2598_v31 }
 0xac9   : > { %v1739_v22 = vpop.f32.mrb[28].mxu1 }
 0xaca   : > { %v2485_v42 = vpop.f32.mrb[29].mxu1 }
 0xacb   : > { %v1742_v43 = vpop.f32.mrb[30].mxu1 }
 0xacc   : > { %v1746_v25 = vpack.c.bf16 %v1742_v43, %v1739_v22  ;;  %v2486_v44 = vpop.f32.mrb[31].mxu1 }
 0xace   : > { %2490 = vmatmul.mubr.msk.bf16.vlgmr.msra.gmra.mrb[24].mxu0 %vm1114_vm3, %v1746_v25 }
 0xacf   : > { %2509 = vmatprep.mubr.msk.bf16.mxu0 %vm2599_vm1, %v2598_v31  ;;  %2502 = vmatpush3.bf16.msra.mxu0 %v2538_v27  ;;  %v2340_v27 = vld [vmem:[%s848_s18] ss:$0 sm:$0xff] }
 0xad0   : > { %2503 = vmatprep.subr.bf16.mxu0 %v2598_v31 }
 0xad3   : > { %2504 = vmatpush3.bf16.msra.mxu0 %v2539_v21 }
 0xad4   : > { %2505 = vmatprep.subr.bf16.mxu0 %v2598_v31 }
 0xad7   : > { %2506 = vmatpush3.bf16.msra.mxu0 %v2540_v23 }
 0xad8   : > { %2507 = vmatprep.subr.bf16.mxu0 %v2598_v31 }
 0xadb   : > { %2508 = vmatpush3.bf16.msra.mxu0 %v2541_v24 }
 0xba1   : > { %v1788_v46 = vpop.f32.mrb[24].mxu0 }
 0xba2   : > { %v1795_v48 = vadd.f32 %v1788_v46, %v1623_v26  ;;  %v2491_v49 = vpop.f32.mrb[25].mxu0  ;;  %v2332_v26 = vld [vmem:[%s3137_s4] ss:$0 sm:$0xff] }
 0xba3   : > { %v1791_v50 = vpop.f32.mrb[26].mxu0 }
 0xba4   : > { %v1804_v51 = vadd.f32 %v2329_v47, %v1795_v48  ;;  %v1796_v52 = vadd.f32 %v1791_v50, %v1624_v30  ;;  %v2492_v54 = vpop.f32.mrb[27].mxu0 }
 0xba6   : > { %v1805_v55 = vadd.f32 %v2329_v47, %v1796_v52  ;;  %v1806_v56 = vadd.f32 %v1804_v51, %v2823_v33 }
 0xba8   : > { %v1810_v57 = vsel %vm936_vm2, %v1806_v56, 0.0  ;;  %v1807_v58 = vadd.f32 %v1805_v55, %v2828_v34  ;;  %v2536_v34 = vld [vmem:[%s2766_s25] sm:$0xff]   ;;  %s3134_s25 = scalar_lea.vmem %s3082_s12, %s2716_s23 }
 0xba9   : > { %1811 = vadd.xlane.f32.xlu0 %v1810_v57  ;;  %2494 = vmatpush3.bf16.msra.mxu1 %v2536_v34  ;;  %v2330_v14 = vld [vmem:[%s3134_s25] ss:$0 sm:$0xff] }
 0xbaa   : > { %v1813_v59 = vsel %vm936_vm2, %v1807_v58, 0.0  ;;  %2495 = vmatprep.subr.bf16.mxu1 %v2598_v31 }
 0xbad   : > { %1814 = vadd.xlane.f32.xlu0 %v1813_v59  ;;  %2496 = vmatpush3.bf16.msra.mxu1 %v2537_v5 }
 0xc36   : > { %v1812_v61 = vpop.xlane.xlu0 %1811 }
 0xc37   : > { %v1817_v45 = vmul.f32 0.03125, %v1812_v61 }
 0xc39   : > { %v1819_v53 = vsub.f32 %v1806_v56, %v1817_v45 }
 0xc3a   : > { %v1815_v63 = vpop.xlane.xlu0 %1814 }
 0xc3b   : > { %v1818_v0 = vmul.f32 0.03125, %v1815_v63  ;;  %v1821_v1 = vmul.f32 %v1819_v53, %v1819_v53 }
 0xc3d   : > { %v1820_v2 = vsub.f32 %v1807_v58, %v1818_v0  ;;  %v1823_v3 = vsel %vm936_vm2, %v1821_v1, 0.0 }
 0xc3e   : > { %1824 = vadd.xlane.f32.xlu0 %v1823_v3 }
 0xc3f   : > { %v1822_v33 = vmul.f32 %v1820_v2, %v1820_v2 }
 0xc41   : > { %v1826_v4 = vsel %vm936_vm2, %v1822_v33, 0.0 }
 0xc42   : > { %1827 = vadd.xlane.f32.xlu0 %v1826_v4 }
 0xccb   : > { %v1825_v6 = vpop.xlane.xlu0 %1824 }
 0xccc   : > { %v1829_v7 = vmul.f32 0.03125, %v1825_v6 }
 0xcce   : > { %v1831_v8 = vadd.f32 1e-12, %v1829_v7 }
 0xccf   : > { %v1828_v9 = vpop.xlane.xlu0 %1827 }
 0xcd0   : > { %2574 = vrsqrt.f32 %v1831_v8  ;;  %v1830_v10 = vmul.f32 0.03125, %v1828_v9 }
 0xcd2   : > { %v1832_v11 = vadd.f32 1e-12, %v1830_v10 }
 0xcd4   : > { %2576 = vrsqrt.f32 %v1832_v11 }
 0xcda   : > { %v2575_v12 = vpop.eup %2574 }
 0xcdb   : > { %v1835_v13 = vmul.f32 %v2575_v12, %v1819_v53 }
 0xcdd   : > { %v1843_v16 = vmul.f32 %v2330_v14, %v1835_v13 }
 0xcde   : > { %v2577_v15 = vpop.eup %2576 }
 0xcdf   : > { %v1836_v60 = vmul.f32 %v2577_v15, %v1820_v2  ;;  %v3019_v62 = vadd.f32 %v2331_v17, %v1843_v16 }
 0xce1   : > { %v1844_v18 = vmul.f32 %v2330_v14, %v1836_v60 }
 0xce3   : > { %v3021_v19 = vadd.f32 %v2331_v17, %v1844_v18 }
 0xce5   : > { %v1853_v20 = vpack.c.bf16 %v3021_v19, %v3019_v62 }
 0xce7   : > { %2498 = vmatmul.mubr.msk.bf16.vlgmr.msra.gmra.mrb[32].mxu1 %vm936_vm2, %v1853_v20 }
 0xdba   : > { %v1914_v28 = vpop.f32.mrb[32].mxu1 }
 0xdbb   : > { %v1915_v29 = vadd.f32 %v2332_v26, %v1914_v28  ;;  %v2499_v30 = vpop.f32.mrb[33].mxu1 }
 0xdbc   : > { %v1917_v32 = vpop.f32.mrb[34].mxu1 }
 0xdbd   : > { %v1923_v35 = vmul.f32 0.70710677, %v1915_v29  ;;  %v1918_v36 = vadd.f32 %v2332_v26, %v1917_v32  ;;  %v2500_v37 = vpop.f32.mrb[35].mxu1  ;;  %v1921_v15 = vmul.f32 0.5, %v1915_v29 }
 0xdbf   : > { %v1925_v38 = vand.u32 2147483647, %v1923_v35  ;;  %v1924_v39 = vmul.f32 0.70710677, %v1918_v36  ;;  %vm1965_vm6 = vcmp.ge.f32.partialorder %v1923_v35, 0.0  ;;  %v1922_v16 = vmul.f32 0.5, %v1918_v36 }
 0xdc1   : > { %v1927_v40 = vmul.f32 0.3275911, %v1925_v38  ;;  %v1926_v41 = vand.u32 2147483647, %v1924_v39  ;;  %v1953_v43 = vsub.f32 0.0, %v1925_v38  ;;  %vm1966_vm7 = vcmp.ge.f32.partialorder %v1924_v39, 0.0 }
 0xdc3   : > { %v1929_v22 = vadd.f32 1.0, %v1927_v40  ;;  %v1928_v31 = vmul.f32 0.3275911, %v1926_v41  ;;  %v1954_v25 = vsub.f32 0.0, %v1926_v41  ;;  %v1955_v46 = vmul.f32 %v1953_v43, %v1925_v38 }
 0xdc5   : > { %2578 = vrcp.f32 %v1929_v22  ;;  %v1930_v42 = vadd.f32 1.0, %v1928_v31  ;;  %v1956_v50 = vmul.f32 %v1954_v25, %v1926_v41  ;;  %v1957_v51 = vmul.f32 1.442695, %v1955_v46 }
 0xdc7   : > { %2580 = vrcp.f32 %v1930_v42  ;;  %v1959_v57 = vmul.f32 1.442695, %v1956_v50  ;;  %v2346_v50 = vld [vmem:[%s851_s2] ss:$0 sm:$0xff] }
 0xdc8   : > { %2582 = vpow2.f32 %v1957_v51 }
 0xdc9   : > { %2584 = vpow2.f32 %v1959_v57 }
 0xdcf   : > { %v2579_v44 = vpop.eup %2578 }
 0xdd0   : > { %v1935_v47 = vmul.f32 1.0614054, %v2579_v44 }
 0xdd1   : > { %v2581_v48 = vpop.eup %2580 }
 0xdd2   : > { %v2336_v49 = vadd.f32 -1.4531521, %v1935_v47  ;;  %v1936_v52 = vmul.f32 1.0614054, %v2581_v48  ;;  %v2583_v33 = vpop.eup %2582 }
 0xdd3   : > { %v2585_v6 = vpop.eup %2584 }
 0xdd4   : > { %v1939_v54 = vmul.f32 %v2579_v44, %v2336_v49  ;;  %v2337_v55 = vadd.f32 -1.4531521, %v1936_v52  ;;  %v2347_v52 = vld [vmem:[%s854_s13] ss:$0 sm:$0xff] }
 0xdd6   : > { %v1941_v56 = vadd.f32 1.4214138, %v1939_v54  ;;  %v1940_v58 = vmul.f32 %v2581_v48, %v2337_v55 }
 0xdd8   : > { %v1943_v59 = vmul.f32 %v2579_v44, %v1941_v56  ;;  %v1942_v61 = vadd.f32 1.4214138, %v1940_v58 }
 0xdda   : > { %v2338_v45 = vadd.f32 -0.28449672, %v1943_v59  ;;  %v1944_v53 = vmul.f32 %v2581_v48, %v1942_v61 }
 0xddc   : > { %v1947_v63 = vmul.f32 %v2579_v44, %v2338_v45  ;;  %v2339_v0 = vadd.f32 -0.28449672, %v1944_v53 }
 0xdde   : > { %v1949_v1 = vadd.f32 0.2548296, %v1947_v63  ;;  %v1948_v2 = vmul.f32 %v2581_v48, %v2339_v0 }
 0xde0   : > { %v1951_v3 = vmul.f32 %v2579_v44, %v1949_v1  ;;  %v1950_v4 = vadd.f32 0.2548296, %v1948_v2 }
 0xde2   : > { %v1961_v34 = vmul.f32 %v2583_v33, %v1951_v3  ;;  %v1952_v5 = vmul.f32 %v2581_v48, %v1950_v4 }
 0xde4   : > { %v1963_v7 = vsub.f32 1.0, %v1961_v34  ;;  %v1962_v8 = vmul.f32 %v2585_v6, %v1952_v5 }
 0xde6   : > { %v1967_v9 = vsub.f32 0.0, %v1963_v7  ;;  %v1964_v10 = vsub.f32 1.0, %v1962_v8 }
 0xde8   : > { %v1969_v11 = vsel %vm1965_vm6, %v1963_v7, %v1967_v9  ;;  %v1968_v12 = vsub.f32 0.0, %v1964_v10 }
 0xde9   : > { %v1971_v13 = vadd.f32 1.0, %v1969_v11 }
 0xdea   : > { %v1970_v14 = vsel %vm1966_vm7, %v1964_v10, %v1968_v12 }
 0xdeb   : > { %v1972_v60 = vadd.f32 1.0, %v1970_v14  ;;  %v1973_v17 = vmul.f32 %v1971_v13, %v1921_v15 }
 0xded   : > { %v1974_v18 = vmul.f32 %v1972_v60, %v1922_v16 }
 0xdef   : > { %v1975_v20 = vpack.c.bf16 %v1974_v18, %v1973_v17 }
 0xdf1   : > { %2510 = vmatmul.mubr.msk.bf16.vlgmr.msra.gmra.mrb[28].mxu0 %vm2015_vm8, %v1975_v20 }
 0xec4   : > { %v2053_v21 = vpop.f32.mrb[28].mxu0 }
 0xec5   : > { %v2054_v23 = vadd.f32 %v2340_v27, %v2053_v21  ;;  %v2511_v24 = vpop.f32.mrb[29].mxu0 }
 0xec6   : > { %v2056_v26 = vpop.f32.mrb[30].mxu0 }
 0xec7   : > { %v2057_v28 = vadd.f32 %v2340_v27, %v2056_v26  ;;  %v2512_v30 = vpop.f32.mrb[31].mxu0  ;;  %v2060_v29 = vadd.f32 %v2054_v23, %v3019_v62 }
 0xec9   : > { %v2064_v32 = vsel %vm936_vm2, %v2060_v29, 0.0  ;;  %v2061_v35 = vadd.f32 %v2057_v28, %v3021_v19 }
 0xeca   : > { %2065 = vadd.xlane.f32.xlu1 %v2064_v32 }
 0xecb   : > { %v2067_v36 = vsel %vm936_vm2, %v2061_v35, 0.0 }
 0xecc   : > { %2068 = vadd.xlane.f32.xlu0 %v2067_v36 }
 0xf57   : > { %v2066_v37 = vpop.xlane.xlu1 %2065 }
 0xf58   : > { %v2070_v38 = vmul.f32 0.03125, %v2066_v37 }
 0xf59   : > { %v2069_v39 = vpop.xlane.xlu0 %2068 }
 0xf5a   : > { %v2072_v40 = vsub.f32 %v2060_v29, %v2070_v38  ;;  %v2071_v41 = vmul.f32 0.03125, %v2069_v39 }
 0xf5c   : > { %v2073_v22 = vsub.f32 %v2061_v35, %v2071_v41  ;;  %v2074_v31 = vmul.f32 %v2072_v40, %v2072_v40 }
 0xf5e   : > { %v2076_v42 = vsel %vm936_vm2, %v2074_v31, 0.0  ;;  %v2075_v62 = vmul.f32 %v2073_v22, %v2073_v22 }
 0xf5f   : > { %2077 = vadd.xlane.f32.xlu0 %v2076_v42 }
 0xf60   : > { %v2079_v43 = vsel %vm936_vm2, %v2075_v62, 0.0 }
 0xf63   : > { %2080 = vadd.xlane.f32.xlu0 %v2079_v43 }
 0xfec   : > { %v2078_v19 = vpop.xlane.xlu0 %2077 }
 0xfed   : > { %v2082_v25 = vmul.f32 0.03125, %v2078_v19 }
 0xfef   : > { %v2084_v44 = vadd.f32 1e-12, %v2082_v25 }
 0xff0   : > { %v2081_v46 = vpop.xlane.xlu0 %2080 }
 0xff1   : > { %2586 = vrsqrt.f32 %v2084_v44  ;;  %v2083_v47 = vmul.f32 0.03125, %v2081_v46 }
 0xff3   : > { %v2085_v48 = vadd.f32 1e-12, %v2083_v47 }
 0xff5   : > { %2588 = vrsqrt.f32 %v2085_v48 }
 0xffb   : > { %v2587_v49 = vpop.eup %2586 }
 0xffc   : > { %v2088_v51 = vmul.f32 %v2587_v49, %v2072_v40 }
 0xffe   : > { %v2096_v54 = vmul.f32 %v2346_v50, %v2088_v51 }
 0xfff   : > { %v2589_v55 = vpop.eup %2588 }
0x1000   : > { %v2104_v56 = vadd.f32 %v2347_v52, %v2096_v54  ;;  %v2089_v57 = vmul.f32 %v2589_v55, %v2073_v22 }
0x1002   : > { %2106 = vst.msk [vmem:[%s3126_s29] sm:$0xff] %vm936_vm2, %v2104_v56  ;;  %v2097_v58 = vmul.f32 %v2346_v50, %v2089_v57 }
0x1004   : > { %v2105_v59 = vadd.f32 %v2347_v52, %v2097_v58 }
0x1006   : > { %2107 = vst.msk [vmem:[%s3126_s29 + $0x8] sm:$0xff] %vm936_vm2, %v2105_v59 }
0x1007 PF: > { %s3140_s24 = sld [smem:[#allocation2_spill]] }
0x100d   : > { %s30_s1 = sadd.s32 1, %s3140_s24  }
0x100e   : > { %p27_p5 = scmp.ge.s32.totalorder %s30_s1, 4  }
0x1010   :  { %29 = sbr.rel (!%p27_p5) target bundleno = 15 (0xf), region = 175 }

</bundles_post_ra>
